<compile_context>
chip_gen: v6e
topology: v6e:2x2x1
jax: 0.10.0
libtpu: 0.0.40
codegen_flags: <defaults>
</compile_context>

<pallas_src>
import jax
import jax.numpy as jnp
from jax import lax
from jax.experimental import pallas as pl
from jax.experimental.pallas import tpu as pltpu

EPS = 1e-5
DROP_P = 0.2
N_OUT = 50      # real FC width
N_PAD = 64      # padded FC width (lane-aligned-ish, unmasked store)


def onedcnn_kernel(x_ref, w1_ref, g1_ref, be1_ref,
                   w2_ref, g2_ref, be2_ref,
                   wfc_ref, bfc_ref, mask_ref,
                   out_ref, y1_scr, y2_scr):
    # ---- input: [B, L] (the singleton C_in was squeezed in the wrapper)
    x = x_ref[...]                                     # f32
    B, L = x.shape
    w1 = w1_ref[...]                                   # [K1=4, C1=32] f32
    K1, C1 = w1.shape
    L1 = L - K1 + 1

    # ---- conv1 (single input channel): K1 small VPU FMAs over [B, L1, C1]
    y1 = x[:, 0:L1, None] * w1[0][None, None, :]
    for k in range(1, K1):
        y1 = y1 + x[:, k:k + L1, None] * w1[k][None, None, :]

    # ---- bn1 (training mode: batch stats, biased var), single-pass stats
    n1 = B * L1
    m1 = jnp.sum(y1, axis=(0, 1), keepdims=True) / n1
    v1 = jnp.maximum(jnp.sum(jnp.square(y1), axis=(0, 1), keepdims=True) / n1
                     - jnp.square(m1), 0.0)
    inv1 = lax.rsqrt(v1 + EPS) * g1_ref[...][None]     # [1,1,C1]
    sh1 = be1_ref[...][None] - m1 * inv1
    # fused affine + ReLU + pool-staging store (odd tail row never normalized)
    P1 = y1_scr.shape[1] // 2
    y1_scr[...] = jnp.maximum(y1[:, :2 * P1, :] * inv1 + sh1, 0.0)

    # ---- maxpool1 (k=2, s=2, floor) via strided reads; bf16-cast AFTER the max
    p1 = jnp.maximum(y1_scr[:, pl.ds(0, P1, 2), :],
                     y1_scr[:, pl.ds(1, P1, 2), :]).astype(jnp.bfloat16)  # [B,P1,C1]

    # ---- conv2 as ONE 2-D im2col matmul: [B*L2, K2*C1=128] x [128, C2]
    #      (bf16 operands built from bf16 slices; f32 accumulation on the MXU)
    KC, C2 = w2_ref.shape                              # 128, 64 (w2 pre-reshaped, bf16)
    K2 = KC // C1
    L2 = P1 - K2 + 1
    cols2 = jnp.concatenate(
        [jnp.concatenate([p1[b, k:k + L2, :] for k in range(K2)], axis=1)
         for b in range(B)], axis=0)                   # [B*L2, 128] bf16
    y2 = jnp.dot(cols2, w2_ref[...],
                 preferred_element_type=jnp.float32)   # [B*L2, C2] f32
    # conv2 bias omitted (cancels under training-mode BN).

    # ---- bn2 single-pass stats over (B, L2) == axis 0
    n2 = B * L2
    m2 = jnp.sum(y2, axis=0, keepdims=True) / n2
    v2 = jnp.maximum(jnp.sum(jnp.square(y2), axis=0, keepdims=True) / n2
                     - jnp.square(m2), 0.0)
    inv2 = lax.rsqrt(v2 + EPS) * g2_ref[...]           # [1,C2]
    sh2 = be2_ref[...] - m2 * inv2
    # fused affine + ReLU + pool-staging store, per batch (static slices)
    P2 = y2_scr.shape[1] // 2
    for b in range(B):
        y2_scr[b, :, :] = jnp.maximum(
            y2[b * L2:b * L2 + 2 * P2, :] * inv2 + sh2, 0.0)

    # ---- maxpool2 via strided reads; bf16-cast AFTER the max, before concat
    p2 = jnp.maximum(y2_scr[:, pl.ds(0, P2, 2), :],
                     y2_scr[:, pl.ds(1, P2, 2), :]).astype(jnp.bfloat16)  # [B,P2,C2]

    # ---- fc4 as ONE matmul with K = P2*C2.  Time-major flatten via a bf16
    #      lane concat; wfc was pre-permuted host-side to match (t*C2 + c) and
    #      padded to N=64 so the output store is unmasked.
    # TODO(synk): a 2-axis dot_general over (P2,C2) would remove this concat;
    # kept as a lane concat for portability across Mosaic toolchains.
    flat = jnp.concatenate([p2[:, t, :] for t in range(P2)], axis=1)      # [B, P2*C2]
    out = jnp.dot(flat, wfc_ref[...],
                  preferred_element_type=jnp.float32) + bfc_ref[...]      # [B, N_PAD]

    # ---- dropout (inverted, train mode); padded keep mask precomputed host-side
    out_ref[...] = out * mask_ref[...]


def init_params(key, p2_len):
    """Deterministic parameter init matching the PyTorch module's shapes/layout."""
    ks = jax.random.split(key, 4)
    # conv1: torch weight [32, 1, 4] -> kernel layout [K=4, C_out=32]
    b = 1.0 / (1 * 4) ** 0.5
    w1 = jax.random.uniform(ks[0], (4, 32), jnp.float32, -b, b)
    g1 = jnp.ones((1, 32), jnp.float32)       # BatchNorm1d default weight
    be1 = jnp.zeros((1, 32), jnp.float32)     # BatchNorm1d default bias
    # conv2: torch weight [64, 32, 4] -> [K, C_in, C_out] -> im2col layout [K*C_in=128, C_out]
    b = 1.0 / (32 * 4) ** 0.5
    w2_t = jax.random.uniform(ks[1], (64, 32, 4), jnp.float32, -b, b)
    w2 = jnp.transpose(w2_t, (2, 1, 0)).reshape(128, 64).astype(jnp.bfloat16)
    g2 = jnp.ones((1, 64), jnp.float32)
    be2 = jnp.zeros((1, 64), jnp.float32)
    # fc4: torch weight [50, flat], flat index = c * P2 + t (channel-major flatten)
    #      -> repacked to [P2*C2, 50] with row index t * C2 + c (kernel's flatten
    #      order), then zero-padded to N=64 output columns.
    flat = 64 * p2_len
    b = 1.0 / flat ** 0.5
    wfc_t = jax.random.uniform(ks[2], (N_OUT, flat), jnp.float32, -b, b)
    wfc = (jnp.transpose(wfc_t.reshape(N_OUT, 64, p2_len), (2, 1, 0))
           .reshape(flat, N_OUT))
    wfc = jnp.pad(wfc, ((0, 0), (0, N_PAD - N_OUT))).astype(jnp.bfloat16)
    bfc = jax.random.uniform(ks[3], (1, N_OUT), jnp.float32, -b, b)
    bfc = jnp.pad(bfc, ((0, 0), (0, N_PAD - N_OUT)))
    # conv biases intentionally not created: they cancel under training-mode BN.
    return (w1, g1, be1, w2, g2, be2, wfc, bfc)


@jax.jit
def onedcnn_forward(x_ncl, params, drop_mask):
    w1, g1, be1, w2, g2, be2, wfc, bfc = params
    x = x_ncl[:, 0, :]                        # NCL -> [B, L] (C_in = 1 squeezed)
    B, L = x.shape
    K1, C1 = w1.shape
    KC, C2 = w2.shape
    K2 = KC // C1
    L1 = L - K1 + 1
    P1 = L1 // 2
    L2 = P1 - K2 + 1
    P2 = L2 // 2
    args = (x, w1, g1, be1, w2, g2, be2, wfc, bfc, drop_mask)
    out = pl.pallas_call(
        onedcnn_kernel,
        out_shape=jax.ShapeDtypeStruct((B, N_PAD), jnp.float32),
        in_specs=[pl.BlockSpec(memory_space=pltpu.MemorySpace.VMEM)] * len(args),
        out_specs=pl.BlockSpec(memory_space=pltpu.MemorySpace.VMEM),
        scratch_shapes=[pltpu.VMEM((B, 2 * P1, C1), jnp.float32),
                        pltpu.VMEM((B, 2 * P2, C2), jnp.float32)],
    )(*args)
    return out[:, :N_OUT]                     # strip FC padding


if __name__ == "__main__":
    key = jax.random.PRNGKey(0)
    k_x, k_p, k_d = jax.random.split(key, 3)

    B, L = 2, 64                       # PyTorch input: [B, 1, L]
    L1 = L - 4 + 1                     # 61
    P1 = L1 // 2                       # 30
    L2 = P1 - 4 + 1                    # 27
    P2 = L2 // 2                       # 13  -> flat = 64 * 13 = 832

    x = jax.random.normal(k_x, (B, 1, L), jnp.float32)
    params = init_params(k_p, P2)
    # TODO(synk): dropout mask uses jax.random, not torch's RNG stream.
    keep_mask = (jax.random.bernoulli(k_d, 1.0 - DROP_P, (B, N_OUT))
                 .astype(jnp.float32) / (1.0 - DROP_P))
    keep_mask = jnp.pad(keep_mask, ((0, 0), (0, N_PAD - N_OUT)))

    out = onedcnn_forward(x, params, keep_mask)
    jax.block_until_ready(out)
    assert out.shape == (B, N_OUT) and out.dtype == jnp.float32
    print("KERNEL_OK")
</pallas_src>

<mosaic_0001>
module attributes {stable_mosaic.version = 11 : i64} {
  func.func @onedcnn_kernel(%arg0: memref<2x64xf32, #tpu.memory_space<vmem>>, %arg1: memref<4x32xf32, #tpu.memory_space<vmem>>, %arg2: memref<1x32xf32, #tpu.memory_space<vmem>>, %arg3: memref<1x32xf32, #tpu.memory_space<vmem>>, %arg4: memref<128x64xbf16, #tpu.memory_space<vmem>>, %arg5: memref<1x64xf32, #tpu.memory_space<vmem>>, %arg6: memref<1x64xf32, #tpu.memory_space<vmem>>, %arg7: memref<832x64xbf16, #tpu.memory_space<vmem>>, %arg8: memref<1x64xf32, #tpu.memory_space<vmem>>, %arg9: memref<2x64xf32, #tpu.memory_space<vmem>>, %arg10: memref<2x64xf32, #tpu.memory_space<vmem>>, %arg11: memref<2x60x32xf32, #tpu.memory_space<vmem>>, %arg12: memref<2x26x64xf32, #tpu.memory_space<vmem>>) attributes {dimension_semantics = [], scalar_prefetch = 0 : i64, scratch_operands = 2 : i64, tpu.core_type = #tpu.core_type<tc>} {
    %c0 = arith.constant 0 : index
    %c0_0 = arith.constant 0 : index
    %0 = vector.load %arg0[%c0, %c0_0] : memref<2x64xf32, #tpu.memory_space<vmem>>, vector<2x64xf32>
    %c0_1 = arith.constant 0 : index
    %c0_2 = arith.constant 0 : index
    %1 = vector.load %arg1[%c0_1, %c0_2] : memref<4x32xf32, #tpu.memory_space<vmem>>, vector<4x32xf32>
    %2 = vector.extract_strided_slice %0 {offsets = [0, 0], sizes = [2, 61], strides = [1, 1]} : vector<2x64xf32> to vector<2x61xf32>
    %3 = vector.shape_cast %2 : vector<2x61xf32> to vector<2x61x1xf32>
    %4 = vector.extract_strided_slice %1 {offsets = [0, 0], sizes = [1, 32], strides = [1, 1]} : vector<4x32xf32> to vector<1x32xf32>
    %5 = vector.shape_cast %4 : vector<1x32xf32> to vector<32xf32>
    %6 = vector.shape_cast %5 : vector<32xf32> to vector<1x1x32xf32>
    %7 = vector.broadcast %3 : vector<2x61x1xf32> to vector<2x61x32xf32>
    %8 = vector.broadcast %6 : vector<1x1x32xf32> to vector<2x61x32xf32>
    %9 = arith.mulf %7, %8 : vector<2x61x32xf32>
    %10 = vector.extract_strided_slice %0 {offsets = [0, 1], sizes = [2, 61], strides = [1, 1]} : vector<2x64xf32> to vector<2x61xf32>
    %11 = vector.shape_cast %10 : vector<2x61xf32> to vector<2x61x1xf32>
    %12 = vector.extract_strided_slice %1 {offsets = [1, 0], sizes = [1, 32], strides = [1, 1]} : vector<4x32xf32> to vector<1x32xf32>
    %13 = vector.shape_cast %12 : vector<1x32xf32> to vector<32xf32>
    %14 = vector.shape_cast %13 : vector<32xf32> to vector<1x1x32xf32>
    %15 = vector.broadcast %11 : vector<2x61x1xf32> to vector<2x61x32xf32>
    %16 = vector.broadcast %14 : vector<1x1x32xf32> to vector<2x61x32xf32>
    %17 = arith.mulf %15, %16 : vector<2x61x32xf32>
    %18 = arith.addf %9, %17 : vector<2x61x32xf32>
    %19 = vector.extract_strided_slice %0 {offsets = [0, 2], sizes = [2, 61], strides = [1, 1]} : vector<2x64xf32> to vector<2x61xf32>
    %20 = vector.shape_cast %19 : vector<2x61xf32> to vector<2x61x1xf32>
    %21 = vector.extract_strided_slice %1 {offsets = [2, 0], sizes = [1, 32], strides = [1, 1]} : vector<4x32xf32> to vector<1x32xf32>
    %22 = vector.shape_cast %21 : vector<1x32xf32> to vector<32xf32>
    %23 = vector.shape_cast %22 : vector<32xf32> to vector<1x1x32xf32>
    %24 = vector.broadcast %20 : vector<2x61x1xf32> to vector<2x61x32xf32>
    %25 = vector.broadcast %23 : vector<1x1x32xf32> to vector<2x61x32xf32>
    %26 = arith.mulf %24, %25 : vector<2x61x32xf32>
    %27 = arith.addf %18, %26 : vector<2x61x32xf32>
    %28 = vector.extract_strided_slice %0 {offsets = [0, 3], sizes = [2, 61], strides = [1, 1]} : vector<2x64xf32> to vector<2x61xf32>
    %29 = vector.shape_cast %28 : vector<2x61xf32> to vector<2x61x1xf32>
    %30 = vector.extract_strided_slice %1 {offsets = [3, 0], sizes = [1, 32], strides = [1, 1]} : vector<4x32xf32> to vector<1x32xf32>
    %31 = vector.shape_cast %30 : vector<1x32xf32> to vector<32xf32>
    %32 = vector.shape_cast %31 : vector<32xf32> to vector<1x1x32xf32>
    %33 = vector.broadcast %29 : vector<2x61x1xf32> to vector<2x61x32xf32>
    %34 = vector.broadcast %32 : vector<1x1x32xf32> to vector<2x61x32xf32>
    %35 = arith.mulf %33, %34 : vector<2x61x32xf32>
    %36 = arith.addf %27, %35 : vector<2x61x32xf32>
    %cst = arith.constant dense<0.000000e+00> : vector<32xf32>
    %37 = vector.multi_reduction <add>, %36, %cst [0, 1] : vector<2x61x32xf32> to vector<32xf32>
    %38 = vector.shape_cast %37 : vector<32xf32> to vector<1x1x32xf32>
    %cst_3 = arith.constant 1.220000e+02 : f32
    %39 = vector.broadcast %cst_3 : f32 to vector<1x1x32xf32>
    %40 = arith.divf %38, %39 : vector<1x1x32xf32>
    %41 = arith.mulf %36, %36 : vector<2x61x32xf32>
    %cst_4 = arith.constant dense<0.000000e+00> : vector<32xf32>
    %42 = vector.multi_reduction <add>, %41, %cst_4 [0, 1] : vector<2x61x32xf32> to vector<32xf32>
    %43 = vector.shape_cast %42 : vector<32xf32> to vector<1x1x32xf32>
    %cst_5 = arith.constant 1.220000e+02 : f32
    %44 = vector.broadcast %cst_5 : f32 to vector<1x1x32xf32>
    %45 = arith.divf %43, %44 : vector<1x1x32xf32>
    %46 = arith.mulf %40, %40 : vector<1x1x32xf32>
    %47 = arith.subf %45, %46 : vector<1x1x32xf32>
    %cst_6 = arith.constant 0.000000e+00 : f32
    %48 = vector.broadcast %cst_6 : f32 to vector<1x1x32xf32>
    %49 = arith.maximumf %47, %48 : vector<1x1x32xf32>
    %cst_7 = arith.constant 9.99999974E-6 : f32
    %50 = vector.broadcast %cst_7 : f32 to vector<1x1x32xf32>
    %51 = arith.addf %49, %50 : vector<1x1x32xf32>
    %52 = math.rsqrt %51 : vector<1x1x32xf32>
    %c0_8 = arith.constant 0 : index
    %c0_9 = arith.constant 0 : index
    %53 = vector.load %arg2[%c0_8, %c0_9] : memref<1x32xf32, #tpu.memory_space<vmem>>, vector<1x32xf32>
    %54 = vector.shape_cast %53 : vector<1x32xf32> to vector<1x1x32xf32>
    %55 = arith.mulf %52, %54 : vector<1x1x32xf32>
    %c0_10 = arith.constant 0 : index
    %c0_11 = arith.constant 0 : index
    %56 = vector.load %arg3[%c0_10, %c0_11] : memref<1x32xf32, #tpu.memory_space<vmem>>, vector<1x32xf32>
    %57 = vector.shape_cast %56 : vector<1x32xf32> to vector<1x1x32xf32>
    %58 = arith.mulf %40, %55 : vector<1x1x32xf32>
    %59 = arith.subf %57, %58 : vector<1x1x32xf32>
    %60 = vector.extract_strided_slice %36 {offsets = [0, 0, 0], sizes = [2, 60, 32], strides = [1, 1, 1]} : vector<2x61x32xf32> to vector<2x60x32xf32>
    %61 = vector.broadcast %55 : vector<1x1x32xf32> to vector<2x60x32xf32>
    %62 = arith.mulf %60, %61 : vector<2x60x32xf32>
    %63 = vector.broadcast %59 : vector<1x1x32xf32> to vector<2x60x32xf32>
    %64 = arith.addf %62, %63 : vector<2x60x32xf32>
    %cst_12 = arith.constant 0.000000e+00 : f32
    %65 = vector.broadcast %cst_12 : f32 to vector<2x60x32xf32>
    %66 = arith.maximumf %64, %65 : vector<2x60x32xf32>
    %c0_13 = arith.constant 0 : index
    %c0_14 = arith.constant 0 : index
    %c0_15 = arith.constant 0 : index
    %67 = vector.load %arg11[%c0_13, %c0_14, %c0_15] : memref<2x60x32xf32, #tpu.memory_space<vmem>>, vector<2x60x32xf32>
    tpu.vector_store %arg11[%c0_13, %c0_14, %c0_15], %66 {strides = array<i32>} : memref<2x60x32xf32, #tpu.memory_space<vmem>>, vector<2x60x32xf32>,
    %c0_16 = arith.constant 0 : index
    %c0_17 = arith.constant 0 : index
    %c0_18 = arith.constant 0 : index
    %68 = tpu.strided_load %arg11[%c0_16, %c0_17, %c0_18] {strides = array<i32: 1, 2, 1>} : memref<2x60x32xf32, #tpu.memory_space<vmem>>, vector<2x30x32xf32>
    %c0_19 = arith.constant 0 : index
    %c1 = arith.constant 1 : index
    %c0_20 = arith.constant 0 : index
    %69 = tpu.strided_load %arg11[%c0_19, %c1, %c0_20] {strides = array<i32: 1, 2, 1>} : memref<2x60x32xf32, #tpu.memory_space<vmem>>, vector<2x30x32xf32>
    %70 = arith.maximumf %68, %69 : vector<2x30x32xf32>
    %71 = arith.truncf %70 : vector<2x30x32xf32> to vector<2x30x32xbf16>
    %72 = vector.extract_strided_slice %71 {offsets = [0, 0, 0], sizes = [1, 27, 32], strides = [1, 1, 1]} : vector<2x30x32xbf16> to vector<1x27x32xbf16>
    %73 = vector.shape_cast %72 : vector<1x27x32xbf16> to vector<27x32xbf16>
    %74 = vector.extract_strided_slice %71 {offsets = [0, 1, 0], sizes = [1, 27, 32], strides = [1, 1, 1]} : vector<2x30x32xbf16> to vector<1x27x32xbf16>
    %75 = vector.shape_cast %74 : vector<1x27x32xbf16> to vector<27x32xbf16>
    %76 = vector.extract_strided_slice %71 {offsets = [0, 2, 0], sizes = [1, 27, 32], strides = [1, 1, 1]} : vector<2x30x32xbf16> to vector<1x27x32xbf16>
    %77 = vector.shape_cast %76 : vector<1x27x32xbf16> to vector<27x32xbf16>
    %78 = vector.extract_strided_slice %71 {offsets = [0, 3, 0], sizes = [1, 27, 32], strides = [1, 1, 1]} : vector<2x30x32xbf16> to vector<1x27x32xbf16>
    %79 = vector.shape_cast %78 : vector<1x27x32xbf16> to vector<27x32xbf16>
    %80 = tpu.concatenate %73, %75, %77, %79 in 1 : vector<27x32xbf16>, vector<27x32xbf16>, vector<27x32xbf16>, vector<27x32xbf16> -> vector<27x128xbf16>
    %81 = vector.extract_strided_slice %71 {offsets = [1, 0, 0], sizes = [1, 27, 32], strides = [1, 1, 1]} : vector<2x30x32xbf16> to vector<1x27x32xbf16>
    %82 = vector.shape_cast %81 : vector<1x27x32xbf16> to vector<27x32xbf16>
    %83 = vector.extract_strided_slice %71 {offsets = [1, 1, 0], sizes = [1, 27, 32], strides = [1, 1, 1]} : vector<2x30x32xbf16> to vector<1x27x32xbf16>
    %84 = vector.shape_cast %83 : vector<1x27x32xbf16> to vector<27x32xbf16>
    %85 = vector.extract_strided_slice %71 {offsets = [1, 2, 0], sizes = [1, 27, 32], strides = [1, 1, 1]} : vector<2x30x32xbf16> to vector<1x27x32xbf16>
    %86 = vector.shape_cast %85 : vector<1x27x32xbf16> to vector<27x32xbf16>
    %87 = vector.extract_strided_slice %71 {offsets = [1, 3, 0], sizes = [1, 27, 32], strides = [1, 1, 1]} : vector<2x30x32xbf16> to vector<1x27x32xbf16>
    %88 = vector.shape_cast %87 : vector<1x27x32xbf16> to vector<27x32xbf16>
    %89 = tpu.concatenate %82, %84, %86, %88 in 1 : vector<27x32xbf16>, vector<27x32xbf16>, vector<27x32xbf16>, vector<27x32xbf16> -> vector<27x128xbf16>
    %90 = tpu.concatenate %80, %89 in 0 : vector<27x128xbf16>, vector<27x128xbf16> -> vector<54x128xbf16>
    %c0_21 = arith.constant 0 : index
    %c0_22 = arith.constant 0 : index
    %91 = vector.load %arg4[%c0_21, %c0_22] : memref<128x64xbf16, #tpu.memory_space<vmem>>, vector<128x64xbf16>
    %cst_23 = arith.constant dense<0.000000e+00> : vector<54x64xf32>
    %92 = tpu.matmul %90, %91, %cst_23 {dimension_numbers = #tpu.dot_dimension_numbers<[1], [0], [0], [1], [0, 0, 1, 1], [], []>} : vector<54x128xbf16>, vector<128x64xbf16>, vector<54x64xf32> -> vector<54x64xf32>
    %cst_24 = arith.constant dense<0.000000e+00> : vector<64xf32>
    %93 = vector.multi_reduction <add>, %92, %cst_24 [0] : vector<54x64xf32> to vector<64xf32>
    %94 = vector.shape_cast %93 : vector<64xf32> to vector<1x64xf32>
    %cst_25 = arith.constant 5.400000e+01 : f32
    %95 = vector.broadcast %cst_25 : f32 to vector<1x64xf32>
    %96 = arith.divf %94, %95 : vector<1x64xf32>
    %97 = arith.mulf %92, %92 : vector<54x64xf32>
    %cst_26 = arith.constant dense<0.000000e+00> : vector<64xf32>
    %98 = vector.multi_reduction <add>, %97, %cst_26 [0] : vector<54x64xf32> to vector<64xf32>
    %99 = vector.shape_cast %98 : vector<64xf32> to vector<1x64xf32>
    %cst_27 = arith.constant 5.400000e+01 : f32
    %100 = vector.broadcast %cst_27 : f32 to vector<1x64xf32>
    %101 = arith.divf %99, %100 : vector<1x64xf32>
    %102 = arith.mulf %96, %96 : vector<1x64xf32>
    %103 = arith.subf %101, %102 : vector<1x64xf32>
    %cst_28 = arith.constant 0.000000e+00 : f32
    %104 = vector.broadcast %cst_28 : f32 to vector<1x64xf32>
    %105 = arith.maximumf %103, %104 : vector<1x64xf32>
    %cst_29 = arith.constant 9.99999974E-6 : f32
    %106 = vector.broadcast %cst_29 : f32 to vector<1x64xf32>
    %107 = arith.addf %105, %106 : vector<1x64xf32>
    %108 = math.rsqrt %107 : vector<1x64xf32>
    %c0_30 = arith.constant 0 : index
    %c0_31 = arith.constant 0 : index
    %109 = vector.load %arg5[%c0_30, %c0_31] : memref<1x64xf32, #tpu.memory_space<vmem>>, vector<1x64xf32>
    %110 = arith.mulf %108, %109 : vector<1x64xf32>
    %c0_32 = arith.constant 0 : index
    %c0_33 = arith.constant 0 : index
    %111 = vector.load %arg6[%c0_32, %c0_33] : memref<1x64xf32, #tpu.memory_space<vmem>>, vector<1x64xf32>
    %112 = arith.mulf %96, %110 : vector<1x64xf32>
    %113 = arith.subf %111, %112 : vector<1x64xf32>
    %114 = vector.extract_strided_slice %92 {offsets = [0, 0], sizes = [26, 64], strides = [1, 1]} : vector<54x64xf32> to vector<26x64xf32>
    %115 = vector.broadcast %110 : vector<1x64xf32> to vector<26x64xf32>
    %116 = arith.mulf %114, %115 : vector<26x64xf32>
    %117 = vector.broadcast %113 : vector<1x64xf32> to vector<26x64xf32>
    %118 = arith.addf %116, %117 : vector<26x64xf32>
    %cst_34 = arith.constant 0.000000e+00 : f32
    %119 = vector.broadcast %cst_34 : f32 to vector<26x64xf32>
    %120 = arith.maximumf %118, %119 : vector<26x64xf32>
    %c0_35 = arith.constant 0 : index
    %c0_36 = arith.constant 0 : index
    %c0_37 = arith.constant 0 : index
    %121 = vector.load %arg12[%c0_35, %c0_36, %c0_37] : memref<2x26x64xf32, #tpu.memory_space<vmem>>, vector<1x26x64xf32>
    %122 = vector.shape_cast %121 : vector<1x26x64xf32> to vector<26x64xf32>
    %123 = vector.shape_cast %120 : vector<26x64xf32> to vector<1x26x64xf32>
    tpu.vector_store %arg12[%c0_35, %c0_36, %c0_37], %123 {strides = array<i32>} : memref<2x26x64xf32, #tpu.memory_space<vmem>>, vector<1x26x64xf32>,
    %124 = vector.extract_strided_slice %92 {offsets = [27, 0], sizes = [26, 64], strides = [1, 1]} : vector<54x64xf32> to vector<26x64xf32>
    %125 = vector.broadcast %110 : vector<1x64xf32> to vector<26x64xf32>
    %126 = arith.mulf %124, %125 : vector<26x64xf32>
    %127 = vector.broadcast %113 : vector<1x64xf32> to vector<26x64xf32>
    %128 = arith.addf %126, %127 : vector<26x64xf32>
    %cst_38 = arith.constant 0.000000e+00 : f32
    %129 = vector.broadcast %cst_38 : f32 to vector<26x64xf32>
    %130 = arith.maximumf %128, %129 : vector<26x64xf32>
    %c1_39 = arith.constant 1 : index
    %c0_40 = arith.constant 0 : index
    %c0_41 = arith.constant 0 : index
    %131 = vector.load %arg12[%c1_39, %c0_40, %c0_41] : memref<2x26x64xf32, #tpu.memory_space<vmem>>, vector<1x26x64xf32>
    %132 = vector.shape_cast %131 : vector<1x26x64xf32> to vector<26x64xf32>
    %133 = vector.shape_cast %130 : vector<26x64xf32> to vector<1x26x64xf32>
    tpu.vector_store %arg12[%c1_39, %c0_40, %c0_41], %133 {strides = array<i32>} : memref<2x26x64xf32, #tpu.memory_space<vmem>>, vector<1x26x64xf32>,
    %c0_42 = arith.constant 0 : index
    %c0_43 = arith.constant 0 : index
    %c0_44 = arith.constant 0 : index
    %134 = tpu.strided_load %arg12[%c0_42, %c0_43, %c0_44] {strides = array<i32: 1, 2, 1>} : memref<2x26x64xf32, #tpu.memory_space<vmem>>, vector<2x13x64xf32>
    %c0_45 = arith.constant 0 : index
    %c1_46 = arith.constant 1 : index
    %c0_47 = arith.constant 0 : index
    %135 = tpu.strided_load %arg12[%c0_45, %c1_46, %c0_47] {strides = array<i32: 1, 2, 1>} : memref<2x26x64xf32, #tpu.memory_space<vmem>>, vector<2x13x64xf32>
    %136 = arith.maximumf %134, %135 : vector<2x13x64xf32>
    %137 = arith.truncf %136 : vector<2x13x64xf32> to vector<2x13x64xbf16>
    %138 = vector.extract_strided_slice %137 {offsets = [0, 0, 0], sizes = [2, 1, 64], strides = [1, 1, 1]} : vector<2x13x64xbf16> to vector<2x1x64xbf16>
    %139 = vector.shape_cast %138 : vector<2x1x64xbf16> to vector<2x64xbf16>
    %140 = vector.extract_strided_slice %137 {offsets = [0, 1, 0], sizes = [2, 1, 64], strides = [1, 1, 1]} : vector<2x13x64xbf16> to vector<2x1x64xbf16>
    %141 = vector.shape_cast %140 : vector<2x1x64xbf16> to vector<2x64xbf16>
    %142 = vector.extract_strided_slice %137 {offsets = [0, 2, 0], sizes = [2, 1, 64], strides = [1, 1, 1]} : vector<2x13x64xbf16> to vector<2x1x64xbf16>
    %143 = vector.shape_cast %142 : vector<2x1x64xbf16> to vector<2x64xbf16>
    %144 = vector.extract_strided_slice %137 {offsets = [0, 3, 0], sizes = [2, 1, 64], strides = [1, 1, 1]} : vector<2x13x64xbf16> to vector<2x1x64xbf16>
    %145 = vector.shape_cast %144 : vector<2x1x64xbf16> to vector<2x64xbf16>
    %146 = vector.extract_strided_slice %137 {offsets = [0, 4, 0], sizes = [2, 1, 64], strides = [1, 1, 1]} : vector<2x13x64xbf16> to vector<2x1x64xbf16>
    %147 = vector.shape_cast %146 : vector<2x1x64xbf16> to vector<2x64xbf16>
    %148 = vector.extract_strided_slice %137 {offsets = [0, 5, 0], sizes = [2, 1, 64], strides = [1, 1, 1]} : vector<2x13x64xbf16> to vector<2x1x64xbf16>
    %149 = vector.shape_cast %148 : vector<2x1x64xbf16> to vector<2x64xbf16>
    %150 = vector.extract_strided_slice %137 {offsets = [0, 6, 0], sizes = [2, 1, 64], strides = [1, 1, 1]} : vector<2x13x64xbf16> to vector<2x1x64xbf16>
    %151 = vector.shape_cast %150 : vector<2x1x64xbf16> to vector<2x64xbf16>
    %152 = vector.extract_strided_slice %137 {offsets = [0, 7, 0], sizes = [2, 1, 64], strides = [1, 1, 1]} : vector<2x13x64xbf16> to vector<2x1x64xbf16>
    %153 = vector.shape_cast %152 : vector<2x1x64xbf16> to vector<2x64xbf16>
    %154 = vector.extract_strided_slice %137 {offsets = [0, 8, 0], sizes = [2, 1, 64], strides = [1, 1, 1]} : vector<2x13x64xbf16> to vector<2x1x64xbf16>
    %155 = vector.shape_cast %154 : vector<2x1x64xbf16> to vector<2x64xbf16>
    %156 = vector.extract_strided_slice %137 {offsets = [0, 9, 0], sizes = [2, 1, 64], strides = [1, 1, 1]} : vector<2x13x64xbf16> to vector<2x1x64xbf16>
    %157 = vector.shape_cast %156 : vector<2x1x64xbf16> to vector<2x64xbf16>
    %158 = vector.extract_strided_slice %137 {offsets = [0, 10, 0], sizes = [2, 1, 64], strides = [1, 1, 1]} : vector<2x13x64xbf16> to vector<2x1x64xbf16>
    %159 = vector.shape_cast %158 : vector<2x1x64xbf16> to vector<2x64xbf16>
    %160 = vector.extract_strided_slice %137 {offsets = [0, 11, 0], sizes = [2, 1, 64], strides = [1, 1, 1]} : vector<2x13x64xbf16> to vector<2x1x64xbf16>
    %161 = vector.shape_cast %160 : vector<2x1x64xbf16> to vector<2x64xbf16>
    %162 = vector.extract_strided_slice %137 {offsets = [0, 12, 0], sizes = [2, 1, 64], strides = [1, 1, 1]} : vector<2x13x64xbf16> to vector<2x1x64xbf16>
    %163 = vector.shape_cast %162 : vector<2x1x64xbf16> to vector<2x64xbf16>
    %164 = tpu.concatenate %139, %141, %143, %145, %147, %149, %151, %153, %155, %157, %159, %161, %163 in 1 : vector<2x64xbf16>, vector<2x64xbf16>, vector<2x64xbf16>, vector<2x64xbf16>, vector<2x64xbf16>, vector<2x64xbf16>, vector<2x64xbf16>, vector<2x64xbf16>, vector<2x64xbf16>, vector<2x64xbf16>, vector<2x64xbf16>, vector<2x64xbf16>, vector<2x64xbf16> -> vector<2x832xbf16>
    %c0_48 = arith.constant 0 : index
    %c0_49 = arith.constant 0 : index
    %165 = vector.load %arg7[%c0_48, %c0_49] : memref<832x64xbf16, #tpu.memory_space<vmem>>, vector<832x64xbf16>
    %cst_50 = arith.constant dense<0.000000e+00> : vector<2x64xf32>
    %166 = tpu.matmul %164, %165, %cst_50 {dimension_numbers = #tpu.dot_dimension_numbers<[1], [0], [0], [1], [0, 0, 1, 1], [], []>} : vector<2x832xbf16>, vector<832x64xbf16>, vector<2x64xf32> -> vector<2x64xf32>
    %c0_51 = arith.constant 0 : index
    %c0_52 = arith.constant 0 : index
    %167 = vector.load %arg8[%c0_51, %c0_52] : memref<1x64xf32, #tpu.memory_space<vmem>>, vector<1x64xf32>
    %168 = vector.broadcast %167 : vector<1x64xf32> to vector<2x64xf32>
    %169 = arith.addf %166, %168 : vector<2x64xf32>
    %c0_53 = arith.constant 0 : index
    %c0_54 = arith.constant 0 : index
    %170 = vector.load %arg9[%c0_53, %c0_54] : memref<2x64xf32, #tpu.memory_space<vmem>>, vector<2x64xf32>
    %171 = arith.mulf %169, %170 : vector<2x64xf32>
    %c0_55 = arith.constant 0 : index
    %c0_56 = arith.constant 0 : index
    %172 = vector.load %arg10[%c0_55, %c0_56] : memref<2x64xf32, #tpu.memory_space<vmem>>, vector<2x64xf32>
    tpu.vector_store %arg10[%c0_55, %c0_56], %171 {strides = array<i32>} : memref<2x64xf32, #tpu.memory_space<vmem>>, vector<2x64xf32>,
    return
  }
}

</mosaic_0001>

<bundles_post_ra>
// kernel: onedcnn_forward.1
= control target key start
LH: loop header
LB: loop body
LE: loop exit
PB: predicated region body
PF: predicated region fallthrough
CT: control target
= control target key end

     0   :  { %v39_v0 = vlaneseq  ;;  %s2610_s0 = inlined_call_operand.vmem [shape: f32[2,64], index: 0, kind: input, shape index: {}]   ;;  %s2611_s1 = inlined_call_operand.vmem [shape: f32[4,32], index: 1, kind: input, shape index: {}]   ;;  %s2612_s2 = inlined_call_operand.vmem [shape: f32[1,32], index: 2, kind: input, shape index: {}]   ;;  %s2613_s3 = inlined_call_operand.vmem [shape: f32[1,32], index: 3, kind: input, shape index: {}]   ;;  %s2614_s4 = inlined_call_operand.vmem [shape: bf16[128,64], index: 4, kind: input, shape index: {}]   ;;  %s2615_s5 = inlined_call_operand.vmem [shape: f32[1,64], index: 5, kind: input, shape index: {}]   ;;  %s2616_s6 = inlined_call_operand.vmem [shape: f32[1,64], index: 6, kind: input, shape index: {}]   ;;  %s2617_s7 = inlined_call_operand.vmem [shape: bf16[832,64], index: 7, kind: input, shape index: {}]   ;;  %s2618_s8 = inlined_call_operand.vmem [shape: f32[1,64], index: 8, kind: input, shape index: {}]   ;;  %s2619_s9 = inlined_call_operand.vmem [shape: f32[2,64], index: 9, kind: input, shape index: {}]   ;;  %s2620_s10 = inlined_call_operand.hbm [shape: f32[2,64], index: 10, kind: output, shape index: {}]  }
   0x1   :  { %v37_v1 = vld [vmem:[%s2610_s0] sm:$0x3] }
   0x2   :  { %v2065_v2 = vshrl.u32 %v39_v0, 7 }
   0x4   :  { %v2068_v3 = vsub.s32 0, %v2065_v2 }
   0x6   :  { %v42_v4 = vrot.slane %v37_v1, %v2068_v3 }
   0x8   :  { %131 = vbcast.lane.b32.xlu1 %v42_v4, 257  ;;  %44 = vbcast.lane.b32.xlu0 %v42_v4, 256 }
   0xc   :  { %135 = vbcast.lane.b32.xlu1 %v42_v4, 265  ;;  %48 = vbcast.lane.b32.xlu0 %v42_v4, 264 }
  0x10   :  { %139 = vbcast.lane.b32.xlu1 %v42_v4, 273  ;;  %52 = vbcast.lane.b32.xlu0 %v42_v4, 272 }
  0x14   :  { %235 = vbcast.lane.b32.xlu1 %v42_v4, 266  ;;  %231 = vbcast.lane.b32.xlu0 %v42_v4, 258 }
  0x18   :  { %143 = vbcast.lane.b32.xlu1 %v42_v4, 281  ;;  %56 = vbcast.lane.b32.xlu0 %v42_v4, 280 }
  0x1c   :  { %331 = vbcast.lane.b32.xlu1 %v42_v4, 259  ;;  %239 = vbcast.lane.b32.xlu0 %v42_v4, 274 }
  0x20   :  { %60 = vbcast.lane.b32.xlu1 %v42_v4, 288  ;;  %335 = vbcast.lane.b32.xlu0 %v42_v4, 267 }
  0x24   :  { %243 = vbcast.lane.b32.xlu1 %v42_v4, 282  ;;  %147 = vbcast.lane.b32.xlu0 %v42_v4, 289 }
  0x28   :  { %64 = vbcast.lane.b32.xlu1 %v42_v4, 296  ;;  %339 = vbcast.lane.b32.xlu0 %v42_v4, 275 }
  0x2c   :  { %247 = vbcast.lane.b32.xlu1 %v42_v4, 290  ;;  %151 = vbcast.lane.b32.xlu0 %v42_v4, 297 }
  0x2d   :  { %15 = vsyncpa [#allocation5], 0  ;;  %v76_v5 = vsub.s32 1, %v2065_v2  ;;  %v38_v7 = vld [vmem:[%s2611_s1] sm:$0xf]  ;;  %v295_v19 = vsub.s32 2, %v2065_v2 }
  0x2e   :  { %v2078_v9 = vrot.slane %v38_v7, %v2068_v3  ;;  %v395_v31 = vsub.s32 3, %v2065_v2  ;;  %vm429_vm0 = vcmask 261120   ;;  %vm443_vm1 = vcmask 258048   ;;  %s2001_s27 = smov 64   ;;  %s2002_s30 = smov 32  }
  0x2f   :  { %v77_v6 = vrot.slane %v37_v1, %v76_v5  ;;  %v2075_v8 = vrot.slane %v38_v7, %v76_v5  ;;  %v2087_v25 = vrot.slane %v38_v7, %v295_v19  ;;  %vm599_vm2 = vcmask 257024   ;;  %s2003_s0 = smov 96   ;;  %s2006_s22 = smov [#allocation4]  }
  0x30   :  { %68 = vbcast.lane.b32.xlu1 %v42_v4, 304  ;;  %343 = vbcast.lane.b32.xlu0 %v42_v4, 283  ;;  %v2094_v38 = vrot.slane %v38_v7, %v395_v31  ;;  %vm674_vm3 = vcmask 1046528   ;;  %vm652_vm4 = vsmask.f32 7424  ;;  %vm703_vm6 = vcmask 785408  }
  0x31   :  { %vm682_vm5 = vsmask.f32 6400  ;;  %vm698_vm7 = vcmask 523264   ;;  %vm761_vm8 = vsmask.f32 5376  ;;  %vm780_vm9 = vcmask 1045504  }
  0x32   :  { %vm781_vm10 = vmand %vm780_vm9, %vm761_vm8  ;;  %vm922_vm11 = vcmask 521216   ;;  %vm995_vm12 = vcmask 517120   ;;  %vm1007_vm13 = vcmask 523267   ;;  %vm1011_vm14 = vcmask 520192   ;;  %s1720_s23 = sshll.u32 %s2006_s22, 4  ;;  %s1721_s23 = int_to_ptr.vmem [resolvable:$true] %s1720_s23 }
  0x33   :  { %vm1039_vm15 = vcmask 1041409   ;;  %p1984_p1 = scmp.lt.s32.totalorder %s1721_s23, %s1721_s23 }
  0x34   :  { %251 = vbcast.lane.b32.xlu1 %v42_v4, 298  ;;  %155 = vbcast.lane.b32.xlu0 %v42_v4, 305 }
  0x38   :  { %72 = vbcast.lane.b32.xlu1 %v42_v4, 312  ;;  %347 = vbcast.lane.b32.xlu0 %v42_v4, 291 }
  0x3c   :  { %255 = vbcast.lane.b32.xlu1 %v42_v4, 306  ;;  %159 = vbcast.lane.b32.xlu0 %v42_v4, 313 }
  0x40   :  { %79 = vbcast.lane.b32.xlu1 %v77_v6, 256  ;;  %351 = vbcast.lane.b32.xlu0 %v42_v4, 299 }
  0x44   :  { %259 = vbcast.lane.b32.xlu1 %v42_v4, 314  ;;  %163 = vbcast.lane.b32.xlu0 %v77_v6, 257 }
  0x48   :  { %83 = vbcast.lane.b32.xlu1 %v77_v6, 264  ;;  %355 = vbcast.lane.b32.xlu0 %v42_v4, 307 }
  0x4c   :  { %263 = vbcast.lane.b32.xlu1 %v77_v6, 258  ;;  %167 = vbcast.lane.b32.xlu0 %v77_v6, 265 }
  0x50   :  { %87 = vbcast.lane.b32.xlu1 %v77_v6, 272  ;;  %359 = vbcast.lane.b32.xlu0 %v42_v4, 315 }
  0x54   :  { %267 = vbcast.lane.b32.xlu1 %v77_v6, 266  ;;  %171 = vbcast.lane.b32.xlu0 %v77_v6, 273 }
  0x58   :  { %91 = vbcast.lane.b32.xlu1 %v77_v6, 280  ;;  %363 = vbcast.lane.b32.xlu0 %v77_v6, 259 }
  0x5c   :  { %271 = vbcast.lane.b32.xlu1 %v77_v6, 274  ;;  %175 = vbcast.lane.b32.xlu0 %v77_v6, 281 }
  0x60   :  { %95 = vbcast.lane.b32.xlu1 %v77_v6, 288  ;;  %367 = vbcast.lane.b32.xlu0 %v77_v6, 267 }
  0x64   :  { %275 = vbcast.lane.b32.xlu1 %v77_v6, 282  ;;  %179 = vbcast.lane.b32.xlu0 %v77_v6, 289 }
  0x68   :  { %99 = vbcast.lane.b32.xlu1 %v77_v6, 296  ;;  %371 = vbcast.lane.b32.xlu0 %v77_v6, 275 }
  0x6c   :  { %279 = vbcast.lane.b32.xlu1 %v77_v6, 290  ;;  %183 = vbcast.lane.b32.xlu0 %v77_v6, 297 }
  0x70   :  { %103 = vbcast.lane.b32.xlu1 %v77_v6, 304  ;;  %375 = vbcast.lane.b32.xlu0 %v77_v6, 283 }
  0x74   :  { %283 = vbcast.lane.b32.xlu1 %v77_v6, 298  ;;  %187 = vbcast.lane.b32.xlu0 %v77_v6, 305 }
  0x78   :  { %107 = vbcast.lane.b32.xlu1 %v77_v6, 312  ;;  %379 = vbcast.lane.b32.xlu0 %v77_v6, 291 }
  0x7a   :  { %v132_v10 = vpop.permute.xlu1 %131  ;;  %v45_v11 = vpop.permute.xlu0 %44 }
  0x7b   :  { %v197_v12 = vmul.f32 %v2075_v8, %v132_v10  ;;  %v113_v13 = vmul.f32 %v2078_v9, %v45_v11 }
  0x7c   :  { %287 = vbcast.lane.b32.xlu1 %v77_v6, 306  ;;  %191 = vbcast.lane.b32.xlu0 %v77_v6, 313 }
  0x7d   :  { %v213_v14 = vadd.f32 %v197_v12, %v113_v13 }
  0x7e   :  { %v136_v15 = vpop.permute.xlu1 %135  ;;  %v49_v16 = vpop.permute.xlu0 %48 }
  0x7f   :  { %v198_v17 = vmul.f32 %v2075_v8, %v136_v15  ;;  %v114_v18 = vmul.f32 %v2078_v9, %v49_v16 }
  0x80   :  { %291 = vbcast.lane.b32.xlu1 %v77_v6, 314  ;;  %383 = vbcast.lane.b32.xlu0 %v77_v6, 299 }
  0x81   :  { %v214_v20 = vadd.f32 %v198_v17, %v114_v18 }
  0x82   :  { %v140_v21 = vpop.permute.xlu1 %139  ;;  %v53_v22 = vpop.permute.xlu0 %52 }
  0x83   :  { %v199_v23 = vmul.f32 %v2075_v8, %v140_v21  ;;  %v115_v24 = vmul.f32 %v2078_v9, %v53_v22 }
  0x84   :  { %391 = vbcast.lane.b32.xlu1 %v77_v6, 315  ;;  %387 = vbcast.lane.b32.xlu0 %v77_v6, 307 }
  0x85   :  { %v215_v26 = vadd.f32 %v199_v23, %v115_v24 }
  0x86   :  { %v236_v27 = vpop.permute.xlu1 %235  ;;  %v232_v28 = vpop.permute.xlu0 %231 }
  0x87   :  { %v298_v29 = vmul.f32 %v2087_v25, %v236_v27  ;;  %v297_v30 = vmul.f32 %v2087_v25, %v232_v28 }
  0x89   :  { %v314_v32 = vadd.f32 %v298_v29, %v214_v20  ;;  %v313_v33 = vadd.f32 %v297_v30, %v213_v14 }
  0x8a   :  { %v144_v34 = vpop.permute.xlu1 %143  ;;  %v57_v35 = vpop.permute.xlu0 %56 }
  0x8b   :  { %v200_v36 = vmul.f32 %v2075_v8, %v144_v34  ;;  %v116_v37 = vmul.f32 %v2078_v9, %v57_v35 }
  0x8d   :  { %v216_v39 = vadd.f32 %v200_v36, %v116_v37 }
  0x8e   :  { %v332_v40 = vpop.permute.xlu1 %331  ;;  %v240_v41 = vpop.permute.xlu0 %239 }
  0x8f   :  { %v397_v42 = vmul.f32 %v2094_v38, %v332_v40  ;;  %v299_v43 = vmul.f32 %v2087_v25, %v240_v41 }
  0x91   :  { %v2098_v44 = vadd.f32 %v397_v42, %v313_v33  ;;  %v315_v45 = vadd.f32 %v299_v43, %v215_v26 }
  0x92   :  { %v61_v46 = vpop.permute.xlu1 %60  ;;  %v336_v47 = vpop.permute.xlu0 %335 }
  0x93   :  { %v398_v48 = vmul.f32 %v2094_v38, %v336_v47  ;;  %v117_v52 = vmul.f32 %v2078_v9, %v61_v46  ;;  %v430_v43 = vsel %vm429_vm0, %v2098_v44, 0.0 }
  0x95   :  { %v2101_v49 = vadd.f32 %v398_v48, %v314_v32 }
  0x96   :  { %v244_v50 = vpop.permute.xlu1 %243  ;;  %v148_v51 = vpop.permute.xlu0 %147 }
  0x97   :  { %v300_v53 = vmul.f32 %v2087_v25, %v244_v50  ;;  %v201_v54 = vmul.f32 %v2075_v8, %v148_v51  ;;  %v471_v35 = vmul.f32 %v2101_v49, %v2101_v49  ;;  %v431_v41 = vsel %vm429_vm0, %v2101_v49, 0.0 }
  0x99   :  { %v316_v55 = vadd.f32 %v300_v53, %v216_v39  ;;  %v217_v56 = vadd.f32 %v201_v54, %v117_v52  ;;  %v470_v39 = vmul.f32 %v2098_v44, %v2098_v44  ;;  %v487_v48 = vsel %vm429_vm0, %v471_v35, 0.0 }
  0x9a   :  { %v65_v57 = vpop.permute.xlu1 %64  ;;  %v340_v58 = vpop.permute.xlu0 %339  ;;  %v432_v54 = vadd.f32 %v431_v41, %v430_v43 }
  0x9b   :  { %v399_v59 = vmul.f32 %v2094_v38, %v340_v58  ;;  %v118_v63 = vmul.f32 %v2078_v9, %v65_v57  ;;  %v486_v53 = vsel %vm429_vm0, %v470_v39, 0.0 }
  0x9d   :  { %v2107_v60 = vadd.f32 %v399_v59, %v315_v45 }
  0x9e   :  { %v248_v61 = vpop.permute.xlu1 %247  ;;  %v152_v62 = vpop.permute.xlu0 %151 }
  0x9f   :  { %v301_v0 = vmul.f32 %v2087_v25, %v248_v61  ;;  %v202_v1 = vmul.f32 %v2075_v8, %v152_v62  ;;  %v472_v40 = vmul.f32 %v2107_v60, %v2107_v60  ;;  %v433_v50 = vsel %vm429_vm0, %v2107_v60, 0.0 }
  0xa0   :  { %v488_v61 = vadd.f32 %v487_v48, %v486_v53  ;;  %v434_v62 = vadd.f32 %v433_v50, %v432_v54 }
  0xa1   :  { %v317_v2 = vadd.f32 %v301_v0, %v217_v56  ;;  %v218_v4 = vadd.f32 %v202_v1, %v118_v63 }
  0xa2   :  { %v69_v5 = vpop.permute.xlu1 %68  ;;  %v344_v6 = vpop.permute.xlu0 %343 }
  0xa3   :  { %v400_v7 = vmul.f32 %v2094_v38, %v344_v6  ;;  %v119_v19 = vmul.f32 %v2078_v9, %v69_v5 }
  0xa5   :  { %v2113_v10 = vadd.f32 %v400_v7, %v316_v55  ;;  %v489_v55 = vsel %vm429_vm0, %v472_v40, 0.0 }
  0xa6   :  { %v252_v11 = vpop.permute.xlu1 %251  ;;  %v156_v12 = vpop.permute.xlu0 %155  ;;  %v490_v7 = vadd.f32 %v489_v55, %v488_v61 }
  0xa7   :  { %v302_v13 = vmul.f32 %v2087_v25, %v252_v11  ;;  %v203_v17 = vmul.f32 %v2075_v8, %v156_v12  ;;  %v473_v45 = vmul.f32 %v2113_v10, %v2113_v10  ;;  %v435_v56 = vsel %vm429_vm0, %v2113_v10, 0.0 }
  0xa8   :  { %v436_v11 = vadd.f32 %v435_v56, %v434_v62 }
  0xa9   :  { %v318_v14 = vadd.f32 %v302_v13, %v218_v4  ;;  %v219_v23 = vadd.f32 %v203_v17, %v119_v19  ;;  %v491_v63 = vsel %vm429_vm0, %v473_v45, 0.0 }
  0xaa   :  { %v73_v15 = vpop.permute.xlu1 %72  ;;  %v348_v16 = vpop.permute.xlu0 %347 }
  0xab   :  { %v401_v18 = vmul.f32 %v2094_v38, %v348_v16  ;;  %v120_v31 = vmul.f32 %v2078_v9, %v73_v15  ;;  %v492_v16 = vadd.f32 %v491_v63, %v490_v7 }
  0xad   :  { %v2119_v20 = vadd.f32 %v401_v18, %v317_v2 }
  0xae   :  { %v256_v21 = vpop.permute.xlu1 %255  ;;  %v160_v22 = vpop.permute.xlu0 %159 }
  0xaf   :  { %v303_v24 = vmul.f32 %v2087_v25, %v256_v21  ;;  %v204_v29 = vmul.f32 %v2075_v8, %v160_v22  ;;  %v474_v57 = vmul.f32 %v2119_v20, %v2119_v20  ;;  %v437_v2 = vsel %vm429_vm0, %v2119_v20, 0.0 }
  0xb0   :  { %v438_v17 = vadd.f32 %v437_v2, %v436_v11 }
  0xb1   :  { %v319_v26 = vadd.f32 %v303_v24, %v219_v23  ;;  %v220_v36 = vadd.f32 %v204_v29, %v120_v31  ;;  %v493_v12 = vsel %vm429_vm0, %v474_v57, 0.0 }
  0xb2   :  { %v80_v27 = vpop.permute.xlu1 %79  ;;  %v352_v28 = vpop.permute.xlu0 %351 }
  0xb3   :  { %v402_v30 = vmul.f32 %v2094_v38, %v352_v28  ;;  %v121_v58 = vmul.f32 %v2078_v9, %v80_v27 }
  0xb5   :  { %v2125_v32 = vadd.f32 %v402_v30, %v318_v14 }
  0xb6   :  { %v260_v33 = vpop.permute.xlu1 %259  ;;  %v164_v34 = vpop.permute.xlu0 %163 }
  0xb7   :  { %v304_v37 = vmul.f32 %v2087_v25, %v260_v33  ;;  %v205_v51 = vmul.f32 %v2075_v8, %v164_v34  ;;  %v475_v4 = vmul.f32 %v2125_v32, %v2125_v32  ;;  %v439_v13 = vsel %vm429_vm0, %v2125_v32, 0.0 }
  0xb8   :  { %v440_v27 = vadd.f32 %v439_v13, %v438_v17 }
  0xb9   :  { %v320_v42 = vadd.f32 %v304_v37, %v220_v36  ;;  %v221_v5 = vadd.f32 %v205_v51, %v121_v58  ;;  %v495_v21 = vsel %vm429_vm0, %v475_v4, 0.0 }
  0xba   :  { %v84_v46 = vpop.permute.xlu1 %83  ;;  %v356_v47 = vpop.permute.xlu0 %355 }
  0xbb   :  { %v403_v52 = vmul.f32 %v2094_v38, %v356_v47  ;;  %v122_v28 = vmul.f32 %v2078_v9, %v84_v46 }
  0xbd   :  { %v2152_v59 = vadd.f32 %v403_v52, %v319_v26  ;;  %v494_v26 = vadd.f32 %v493_v12, %v492_v16 }
  0xbe   :  { %v264_v0 = vpop.permute.xlu1 %263  ;;  %v168_v1 = vpop.permute.xlu0 %167 }
  0xbf   :  { %v305_v6 = vmul.f32 %v2087_v25, %v264_v0  ;;  %v476_v14 = vmul.f32 %v2152_v59, %v2152_v59  ;;  %v441_v22 = vsel %vm429_vm0, %v2152_v59, 0.0  ;;  %v206_v23 = vmul.f32 %v2075_v8, %v168_v1 }
  0xc0   :  { %v496_v31 = vadd.f32 %v495_v21, %v494_v26  ;;  %v442_v33 = vadd.f32 %v441_v22, %v440_v27  ;;  %v1916_v21 = vld [vmem:[%s2614_s4 + $0x30] sm:$0xff]  }
  0xc1   :  { %v321_v15 = vadd.f32 %v305_v6, %v221_v5  ;;  %v497_v29 = vsel %vm429_vm0, %v476_v14, 0.0  ;;  %v222_v36 = vadd.f32 %v206_v23, %v122_v28 }
  0xc2   :  { %v88_v18 = vpop.permute.xlu1 %87  ;;  %v360_v19 = vpop.permute.xlu0 %359  ;;  %v498_v41 = vadd.f32 %v497_v29, %v496_v31  ;;  %v1917_v31 = vld [vmem:[%s2614_s4 + $0x28] sm:$0xff]  }
  0xc3   :  { %v404_v24 = vmul.f32 %v2094_v38, %v360_v19  ;;  %v123_v52 = vmul.f32 %v2078_v9, %v88_v18  ;;  %v1915_v19 = vld [vmem:[%s2614_s4 + $0x38] sm:$0xff]  }
  0xc4   :  { %1873 = vmatprep.subr.bf16.mxu0 %v1915_v19 }
  0xc5   :  { %v2172_v30 = vadd.f32 %v404_v24, %v320_v42  ;;  %1874 = vmatpush3.bf16.msra.mxu0 %v1915_v19 }
  0xc6   :  { %v268_v34 = vpop.permute.xlu1 %267  ;;  %v172_v35 = vpop.permute.xlu0 %171  ;;  %1875 = vmatprep.subr.bf16.mxu0 %v1916_v21 }
  0xc7   :  { %v444_v37 = vsel %vm443_vm1, %v2172_v30, 0.0  ;;  %v477_v39 = vmul.f32 %v2172_v30, %v2172_v30  ;;  %v306_v40 = vmul.f32 %v2087_v25, %v268_v34  ;;  %v207_v50 = vmul.f32 %v2075_v8, %v172_v35 }
  0xc8   :  { %v445_v43 = vadd.f32 %v444_v37, %v442_v33 }
  0xc9   :  { %v499_v45 = vsel %vm443_vm1, %v477_v39, 0.0  ;;  %v322_v46 = vadd.f32 %v306_v40, %v222_v36  ;;  %v223_v56 = vadd.f32 %v207_v50, %v123_v52  ;;  %1876 = vmatpush3.bf16.msra.mxu0 %v1916_v21 }
  0xca   :  { %v500_v42 = vadd.f32 %v499_v45, %v498_v41  ;;  %v92_v47 = vpop.permute.xlu1 %91  ;;  %v364_v48 = vpop.permute.xlu0 %363  ;;  %1877 = vmatprep.subr.bf16.mxu0 %v1917_v31 }
  0xcb   :  { %v405_v51 = vmul.f32 %v2094_v38, %v364_v48  ;;  %v124_v7 = vmul.f32 %v2078_v9, %v92_v47 }
  0xcd   :  { %v2183_v53 = vadd.f32 %v405_v51, %v321_v15  ;;  %1878 = vmatpush3.bf16.msra.mxu0 %v1917_v31 }
  0xce   :  { %v272_v54 = vpop.permute.xlu1 %271  ;;  %v176_v55 = vpop.permute.xlu0 %175 }
  0xcf   :  { %v446_v57 = vsel %vm429_vm0, %v2183_v53, 0.0  ;;  %v478_v58 = vmul.f32 %v2183_v53, %v2183_v53  ;;  %v307_v61 = vmul.f32 %v2087_v25, %v272_v54  ;;  %v208_v5 = vmul.f32 %v2075_v8, %v176_v55 }
  0xd0   :  { %v447_v62 = vadd.f32 %v446_v57, %v445_v43 }
  0xd1   :  { %v501_v63 = vsel %vm429_vm0, %v478_v58, 0.0  ;;  %v323_v0 = vadd.f32 %v307_v61, %v223_v56  ;;  %v224_v14 = vadd.f32 %v208_v5, %v124_v7 }
  0xd2   :  { %v502_v1 = vadd.f32 %v501_v63, %v500_v42  ;;  %v96_v2 = vpop.permute.xlu1 %95  ;;  %v368_v4 = vpop.permute.xlu0 %367 }
  0xd3   :  { %v406_v6 = vmul.f32 %v2094_v38, %v368_v4  ;;  %v125_v33 = vmul.f32 %v2078_v9, %v96_v2 }
  0xd5   :  { %v2194_v11 = vadd.f32 %v406_v6, %v322_v46 }
  0xd6   :  { %v276_v12 = vpop.permute.xlu1 %275  ;;  %v180_v13 = vpop.permute.xlu0 %179 }
  0xd7   :  { %v448_v15 = vsel %vm429_vm0, %v2194_v11, 0.0  ;;  %v479_v16 = vmul.f32 %v2194_v11, %v2194_v11  ;;  %v308_v17 = vmul.f32 %v2087_v25, %v276_v12  ;;  %v209_v28 = vmul.f32 %v2075_v8, %v180_v13 }
  0xd8   :  { %v449_v18 = vadd.f32 %v448_v15, %v447_v62 }
  0xd9   :  { %v503_v22 = vsel %vm429_vm0, %v479_v16, 0.0  ;;  %v324_v23 = vadd.f32 %v308_v17, %v224_v14  ;;  %v225_v37 = vadd.f32 %v209_v28, %v125_v33 }
  0xda   :  { %v504_v24 = vadd.f32 %v503_v22, %v502_v1  ;;  %v100_v26 = vpop.permute.xlu1 %99  ;;  %v372_v27 = vpop.permute.xlu0 %371 }
  0xdb   :  { %v407_v29 = vmul.f32 %v2094_v38, %v372_v27  ;;  %v126_v52 = vmul.f32 %v2078_v9, %v100_v26 }
  0xdd   :  { %v2214_v34 = vadd.f32 %v407_v29, %v323_v0 }
  0xde   :  { %v280_v35 = vpop.permute.xlu1 %279  ;;  %v184_v36 = vpop.permute.xlu0 %183 }
  0xdf   :  { %v450_v39 = vsel %vm429_vm0, %v2214_v34, 0.0  ;;  %v480_v40 = vmul.f32 %v2214_v34, %v2214_v34  ;;  %v309_v41 = vmul.f32 %v2087_v25, %v280_v35  ;;  %v210_v50 = vmul.f32 %v2075_v8, %v184_v36 }
  0xe0   :  { %v451_v43 = vadd.f32 %v450_v39, %v449_v18 }
  0xe1   :  { %v505_v45 = vsel %vm429_vm0, %v480_v40, 0.0  ;;  %v325_v46 = vadd.f32 %v309_v41, %v225_v37  ;;  %v226_v57 = vadd.f32 %v210_v50, %v126_v52 }
  0xe2   :  { %v506_v42 = vadd.f32 %v505_v45, %v504_v24  ;;  %v104_v47 = vpop.permute.xlu1 %103  ;;  %v376_v48 = vpop.permute.xlu0 %375 }
  0xe3   :  { %v408_v51 = vmul.f32 %v2094_v38, %v376_v48  ;;  %v127_v12 = vmul.f32 %v2078_v9, %v104_v47 }
  0xe5   :  { %v2225_v54 = vadd.f32 %v408_v51, %v324_v23 }
  0xe6   :  { %v284_v55 = vpop.permute.xlu1 %283  ;;  %v188_v56 = vpop.permute.xlu0 %187 }
  0xe7   :  { %v452_v58 = vsel %vm429_vm0, %v2225_v54, 0.0  ;;  %v481_v61 = vmul.f32 %v2225_v54, %v2225_v54  ;;  %v310_v62 = vmul.f32 %v2087_v25, %v284_v55  ;;  %v211_v4 = vmul.f32 %v2075_v8, %v188_v56 }
  0xe8   :  { %v453_v63 = vadd.f32 %v452_v58, %v451_v43 }
  0xe9   :  { %v507_v0 = vsel %vm429_vm0, %v481_v61, 0.0  ;;  %v326_v1 = vadd.f32 %v310_v62, %v226_v57  ;;  %v227_v14 = vadd.f32 %v211_v4, %v127_v12 }
  0xea   :  { %v508_v2 = vadd.f32 %v507_v0, %v506_v42  ;;  %v108_v5 = vpop.permute.xlu1 %107  ;;  %v380_v6 = vpop.permute.xlu0 %379 }
  0xeb   :  { %v409_v7 = vmul.f32 %v2094_v38, %v380_v6  ;;  %v128_v23 = vmul.f32 %v2078_v9, %v108_v5 }
  0xed   :  { %v2236_v13 = vadd.f32 %v409_v7, %v325_v46 }
  0xee   :  { %v288_v15 = vpop.permute.xlu1 %287  ;;  %v192_v16 = vpop.permute.xlu0 %191 }
  0xef   :  { %v454_v17 = vsel %vm429_vm0, %v2236_v13, 0.0  ;;  %v482_v18 = vmul.f32 %v2236_v13, %v2236_v13  ;;  %v311_v19 = vmul.f32 %v2087_v25, %v288_v15  ;;  %v212_v21 = vmul.f32 %v2075_v8, %v192_v16 }
  0xf0   :  { %v455_v22 = vadd.f32 %v454_v17, %v453_v63 }
  0xf1   :  { %v509_v24 = vsel %vm429_vm0, %v482_v18, 0.0  ;;  %v327_v26 = vadd.f32 %v311_v19, %v227_v14  ;;  %v228_v31 = vadd.f32 %v212_v21, %v128_v23  ;;  %v529_v23 = vld [vmem:[%s2612_s2] sm:$0x1] }
  0xf2   :  { %v510_v27 = vadd.f32 %v509_v24, %v508_v2  ;;  %v292_v28 = vpop.permute.xlu1 %291  ;;  %v384_v29 = vpop.permute.xlu0 %383 }
  0xf3   :  { %v312_v33 = vmul.f32 %v2087_v25, %v292_v28  ;;  %v410_v35 = vmul.f32 %v2094_v38, %v384_v29 }
  0xf5   :  { %v328_v36 = vadd.f32 %v312_v33, %v228_v31  ;;  %v426_v37 = vadd.f32 %v410_v35, %v326_v1 }
  0xf6   :  { %v392_v39 = vpop.permute.xlu1 %391  ;;  %v388_v40 = vpop.permute.xlu0 %387 }
  0xf7   :  { %v456_v8 = vsel %vm429_vm0, %v426_v37, 0.0  ;;  %v483_v41 = vmul.f32 %v426_v37, %v426_v37  ;;  %v412_v9 = vmul.f32 %v2094_v38, %v392_v39  ;;  %v411_v43 = vmul.f32 %v2094_v38, %v388_v40 }
  0xf8   :  { %v457_v45 = vadd.f32 %v456_v8, %v455_v22 }
  0xf9   :  { %v511_v46 = vsel %vm429_vm0, %v483_v41, 0.0  ;;  %v428_v42 = vadd.f32 %v412_v9, %v328_v36  ;;  %v427_v47 = vadd.f32 %v411_v43, %v327_v26 }
  0xfa   :  { %v512_v48 = vadd.f32 %v511_v46, %v510_v27  ;;  %v531_v27 = vld [vmem:[%s2613_s3] sm:$0x1] }
  0xfb   :  { %v485_v25 = vmul.f32 %v428_v42, %v428_v42  ;;  %v458_v50 = vsel %vm429_vm0, %v427_v47, 0.0  ;;  %v484_v51 = vmul.f32 %v427_v47, %v427_v47  ;;  %v460_v55 = vsel %vm443_vm1, %v428_v42, 0.0 }
  0xfc   :  { %v459_v52 = vadd.f32 %v458_v50, %v457_v45 }
  0xfd   :  { %v513_v56 = vsel %vm429_vm0, %v484_v51, 0.0  ;;  %v515_v61 = vsel %vm443_vm1, %v485_v25, 0.0 }
  0xfe   :  { %v461_v57 = vadd.f32 %v460_v55, %v459_v52  ;;  %v514_v58 = vadd.f32 %v513_v56, %v512_v48 }
 0x100   :  { %v462_v38 = vrot.slane %v461_v57, 4  ;;  %v516_v62 = vadd.f32 %v515_v61, %v514_v58 }
 0x102   :  { %v463_v63 = vadd.f32 %v462_v38, %v461_v57  ;;  %v517_v0 = vrot.slane %v516_v62, 4 }
 0x104   :  { %v464_v1 = vrot.slane %v463_v63, 2  ;;  %v518_v2 = vadd.f32 %v517_v0, %v516_v62 }
 0x106   :  { %v465_v4 = vadd.f32 %v464_v1, %v463_v63  ;;  %v519_v5 = vrot.slane %v518_v2, 2 }
 0x108   :  { %v466_v6 = vrot.slane %v465_v4, 1  ;;  %v520_v7 = vadd.f32 %v519_v5, %v518_v2 }
 0x10a   :  { %v467_v12 = vadd.f32 %v466_v6, %v465_v4  ;;  %v521_v14 = vrot.slane %v520_v7, 1 }
 0x10c   :  { %v469_v15 = vmul.f32 0.008196721, %v467_v12  ;;  %v522_v16 = vadd.f32 %v521_v14, %v520_v7 }
 0x10e   :  { %v523_v17 = vmul.f32 0.008196721, %v522_v16  ;;  %v524_v18 = vmul.f32 %v469_v15, %v469_v15 }
 0x110   :  { %v525_v19 = vsub.f32 %v523_v17, %v524_v18 }
 0x112   :  { %v526_v21 = vmax.f32 %v525_v19, 0.0 }
 0x114   :  { %v527_v22 = vadd.f32 1e-05, %v526_v21 }
 0x116   :  { %1975 = vrsqrt.f32 %v527_v22 }
 0x123   :  { %v1976_v24 = vpop.eup %1975 }
 0x124   :  { %v530_v26 = vmul.f32 %v1976_v24, %v529_v23 }
 0x126   :  { %v532_v28 = vmul.f32 %v530_v26, %v469_v15  ;;  %v537_v29 = vrot.slane %v530_v26, %v2068_v3  ;;  %v1918_v15 = vld [vmem:[%s2614_s4 + $0x20] sm:$0xff]  }
 0x127   :  { %1879 = vmatprep.subr.bf16.mxu0 %v1918_v15 }
 0x128   :  { %v533_v31 = vsub.f32 %v531_v27, %v532_v28  ;;  %v552_v33 = vmul.f32 %v537_v29, %v427_v47  ;;  %v542_v35 = vmul.f32 %v537_v29, %v2119_v20  ;;  %v543_v36 = vmul.f32 %v537_v29, %v2125_v32  ;;  %1880 = vmatpush3.bf16.msra.mxu0 %v1918_v15 }
 0x129   :  { %v544_v39 = vmul.f32 %v537_v29, %v2152_v59  ;;  %v545_v40 = vmul.f32 %v537_v29, %v2172_v30  ;;  %v553_v8 = vmul.f32 %v537_v29, %v428_v42  ;;  %v546_v41 = vmul.f32 %v537_v29, %v2183_v53 }
 0x12a   :  { %v558_v9 = vrot.slane %v533_v31, %v2068_v3  ;;  %v547_v43 = vmul.f32 %v537_v29, %v2194_v11  ;;  %v548_v45 = vmul.f32 %v537_v29, %v2214_v34  ;;  %v549_v46 = vmul.f32 %v537_v29, %v2225_v54 }
 0x12b   :  { %v550_v47 = vmul.f32 %v537_v29, %v2236_v13  ;;  %v551_v20 = vmul.f32 %v537_v29, %v426_v37  ;;  %v538_v32 = vmul.f32 %v537_v29, %v2098_v44  ;;  %v539_v59 = vmul.f32 %v537_v29, %v2101_v49 }
 0x12c   :  { %v574_v48 = vadd.f32 %v558_v9, %v552_v33  ;;  %v564_v30 = vadd.f32 %v558_v9, %v542_v35  ;;  %v565_v42 = vadd.f32 %v558_v9, %v543_v36  ;;  %v566_v25 = vadd.f32 %v558_v9, %v544_v39  ;;  %v1919_v39 = vld [vmem:[%s2614_s4 + $0x18] sm:$0xff]  }
 0x12d   :  { %v567_v53 = vadd.f32 %v558_v9, %v545_v40  ;;  %v575_v50 = vadd.f32 %v558_v9, %v553_v8  ;;  %v568_v51 = vadd.f32 %v558_v9, %v546_v41  ;;  %v569_v52 = vadd.f32 %v558_v9, %v547_v43  ;;  %1881 = vmatprep.subr.bf16.mxu0 %v1919_v39 }
 0x12e   :  { %v590_v11 = vmax.f32 %v574_v48, 0.0  ;;  %v580_v55 = vmax.f32 %v564_v30, 0.0  ;;  %v581_v34 = vmax.f32 %v565_v42, 0.0  ;;  %v582_v56 = vmax.f32 %v566_v25, 0.0  ;;  %1882 = vmatpush3.bf16.msra.mxu0 %v1919_v39 }
 0x12f   :  { %v583_v54 = vmax.f32 %v567_v53, 0.0  ;;  %v591_v57 = vmax.f32 %v575_v50, 0.0  ;;  %v570_v13 = vadd.f32 %v558_v9, %v548_v45  ;;  %v571_v37 = vadd.f32 %v558_v9, %v549_v46  ;;  %v1920_v50 = vld [vmem:[%s2614_s4 + $0x10] sm:$0xff]  }
 0x130   :  { %607 = vst.msk [vmem:[#allocation2 + $0x70] sm:$0xff] %vm429_vm0, %v590_v11  ;;  %596 = vst.msk [vmem:[#allocation2 + $0x20] sm:$0xff] %vm429_vm0, %v580_v55  ;;  %v572_v44 = vadd.f32 %v558_v9, %v550_v47  ;;  %v573_v49 = vadd.f32 %v558_v9, %v551_v20  ;;  %v584_v58 = vmax.f32 %v568_v51, 0.0  ;;  %v585_v61 = vmax.f32 %v569_v52, 0.0  ;;  %1883 = vmatprep.subr.bf16.mxu0 %v1920_v50 }
 0x131   :  { %597 = vst.msk [vmem:[#allocation2 + $0x28] sm:$0xff] %vm429_vm0, %v581_v34  ;;  %598 = vst.msk [vmem:[#allocation2 + $0x30] sm:$0xff] %vm429_vm0, %v582_v56  ;;  %v586_v38 = vmax.f32 %v570_v13, 0.0  ;;  %v587_v62 = vmax.f32 %v571_v37, 0.0  ;;  %v540_v63 = vmul.f32 %v537_v29, %v2107_v60  ;;  %v541_v0 = vmul.f32 %v537_v29, %v2113_v10 }
 0x132   :  { %600 = vst.msk [vmem:[#allocation2 + $0x38] sm:$0xf] %vm599_vm2, %v583_v54  ;;  %608 = vst.msk [vmem:[#allocation2 + $0x78] sm:$0xf] %vm599_vm2, %v591_v57  ;;  %v588_v1 = vmax.f32 %v572_v44, 0.0  ;;  %v589_v2 = vmax.f32 %v573_v49, 0.0  ;;  %v560_v4 = vadd.f32 %v558_v9, %v538_v32  ;;  %v561_v5 = vadd.f32 %v558_v9, %v539_v59  ;;  %1884 = vmatpush3.bf16.msra.mxu0 %v1920_v50 }
 0x133   :  { %601 = vst.msk [vmem:[#allocation2 + $0x40] sm:$0xff] %vm429_vm0, %v584_v58  ;;  %602 = vst.msk [vmem:[#allocation2 + $0x48] sm:$0xff] %vm429_vm0, %v585_v61  ;;  %v562_v6 = vadd.f32 %v558_v9, %v540_v63  ;;  %v563_v7 = vadd.f32 %v558_v9, %v541_v0  ;;  %v1921_v61 = vld [vmem:[%s2614_s4 + $0x8] sm:$0xff]  }
 0x134   :  { %603 = vst.msk [vmem:[#allocation2 + $0x50] sm:$0xff] %vm429_vm0, %v586_v38  ;;  %604 = vst.msk [vmem:[#allocation2 + $0x58] sm:$0xff] %vm429_vm0, %v587_v62  ;;  %v576_v60 = vmax.f32 %v560_v4, 0.0  ;;  %v577_v10 = vmax.f32 %v561_v5, 0.0  ;;  %1885 = vmatprep.subr.bf16.mxu0 %v1921_v61 }
 0x135   :  { %605 = vst.msk [vmem:[#allocation2 + $0x60] sm:$0xff] %vm429_vm0, %v588_v1  ;;  %606 = vst.msk [vmem:[#allocation2 + $0x68] sm:$0xff] %vm429_vm0, %v589_v2  ;;  %v578_v12 = vmax.f32 %v562_v6, 0.0  ;;  %v579_v14 = vmax.f32 %v563_v7, 0.0 }
 0x136   :  { %592 = vst.msk [vmem:[#allocation2] sm:$0xff] %vm429_vm0, %v576_v60  ;;  %593 = vst.msk [vmem:[#allocation2 + $0x8] sm:$0xff] %vm429_vm0, %v577_v10  ;;  %1886 = vmatpush3.bf16.msra.mxu0 %v1921_v61  ;;  %v1928_v61 = vld [vmem:[%s2617_s7 + $0xb8] sm:$0xff]  }
 0x137   :  { %594 = vst.msk [vmem:[#allocation2 + $0x10] sm:$0xff] %vm429_vm0, %v578_v12  ;;  %595 = vst.msk [vmem:[#allocation2 + $0x18] sm:$0xff] %vm429_vm0, %v579_v14  ;;  %v1922_v14 = vld [vmem:[%s2614_s4] sm:$0xff]  }
 0x138   :  { %v613_v16 = vld [vmem:[#allocation2 + $0x20] ss:$2 sm:$0xff]  ;;  %v629_v17 = vld [vmem:[#allocation2 + $0x21] ss:$2 sm:$0xff]  ;;  %1887 = vmatprep.subr.bf16.mxu0 %v1922_v14 }
 0x139   :  { %v615_v18 = vld [vmem:[#allocation2 + $0x30] ss:$2 sm:$0x3f]  ;;  %v631_v19 = vld [vmem:[#allocation2 + $0x31] ss:$2 sm:$0x3f]  ;;  %v642_v21 = vmax.f32 %v613_v16, %v629_v17 }
 0x13a   :  { %v643_v22 = vmax.f32 %v615_v18, %v631_v19  ;;  %v617_v23 = vld [vmem:[#allocation2 + $0x40] ss:$2 sm:$0xff]  ;;  %v623_v24 = vld [vmem:[#allocation2 + $0x70] ss:$2 sm:$0x3f]  ;;  %1888 = vmatpush3.bf16.msra.mxu0 %v1922_v14 }
 0x13b   :  { %v619_v26 = vld [vmem:[#allocation2 + $0x50] ss:$2 sm:$0xff]  ;;  %v633_v27 = vld [vmem:[#allocation2 + $0x41] ss:$2 sm:$0xff]  ;;  %v635_v28 = vld [vmem:[#allocation2 + $0x51] ss:$2 sm:$0xff] }
 0x13c   :  { %v2296_v29 = vpack.c.bf16 %v643_v22, %v642_v21  ;;  %v621_v31 = vld [vmem:[#allocation2 + $0x60] ss:$2 sm:$0xff]  ;;  %v637_v33 = vld [vmem:[#allocation2 + $0x61] ss:$2 sm:$0xff]  ;;  %v644_v35 = vmax.f32 %v617_v23, %v633_v27  ;;  %v645_v36 = vmax.f32 %v619_v26, %v635_v28  ;;  %v1939_v14 = vld [vmem:[%s2617_s7 + $0x18] sm:$0xff]  }
 0x13d   :  { %v639_v40 = vld [vmem:[#allocation2 + $0x71] ss:$2 sm:$0x3f]  ;;  %v646_v8 = vmax.f32 %v621_v31, %v637_v33  ;;  %v609_v46 = vld [vmem:[#allocation2] ss:$2 sm:$0xff] }
 0x13e   :  { %v676_v41 = vrot.slane %v2296_v29, 1  ;;  %v647_v9 = vmax.f32 %v623_v24, %v639_v40  ;;  %v2302_v43 = vpack.c.bf16 %v645_v36, %v644_v35  ;;  %v661_v45 = vshll.u32 %v2296_v29, 16  ;;  %v625_v47 = vld [vmem:[#allocation2 + $0x1] ss:$2 sm:$0xff]  ;;  %v611_v32 = vld [vmem:[#allocation2 + $0x10] ss:$2 sm:$0xff] }
 0x13f   :  { %v665_v20 = vshrl.u32 %v2296_v29, 16  ;;  %v627_v59 = vld [vmem:[#allocation2 + $0x11] ss:$2 sm:$0xff]  ;;  %v640_v48 = vmax.f32 %v609_v46, %v625_v47 }
 0x140   :  { %680 = vrot.lane.b32.xlu0 %v676_v41, %s2001_s27  ;;  %v2307_v30 = vpack.c.bf16 %v647_v9, %v646_v8  ;;  %v731_v42 = vrot.slane %v2302_v43, 1  ;;  %v663_v25 = vrot.slane %v661_v45, 1  ;;  %v641_v53 = vmax.f32 %v611_v32, %v627_v59 }
 0x141   :  { %v711_v51 = vshrl.u32 %v2302_v43, 16  ;;  %v713_v52 = vshll.u32 %v2302_v43, 16  ;;  %v686_v0 = vrot.slane %v665_v20, 1  ;;  %v687_v7 = vrot.slane %v661_v45, 2 }
 0x142   :  { %v732_v11 = vrot.slane %v2307_v30, 1  ;;  %v667_v55 = vor.u32 %v665_v20, %v663_v25  ;;  %v2316_v34 = vpack.c.bf16 %v641_v53, %v640_v48  ;;  %v718_v56 = vshll.u32 %v2307_v30, 16 }
 0x143   :  { %v715_v54 = vrot.slane %v713_v52, 1  ;;  %v722_v57 = vshrl.u32 %v2307_v30, 16  ;;  %v738_v13 = vrot.slane %v711_v51, 1  ;;  %v739_v37 = vrot.slane %v713_v52, 2 }
 0x144   :  { %v733_v44 = vsel %vm674_vm3, %v731_v42, %v732_v11  ;;  %670 = vrot.lane.b32.xlu0 %v667_v55, %s2002_s30  ;;  %v675_v49 = vrot.slane %v2316_v34, 1  ;;  %v742_v58 = vrot.slane %v718_v56, 2  ;;  %v720_v62 = vrot.slane %v718_v56, 1 }
 0x145   :  { %734 = vrot.lane.b32.xlu1 %v733_v44, %s2001_s27  ;;  %v716_v38 = vor.u32 %v715_v54, %v711_v51  ;;  %v741_v63 = vrot.slane %v722_v57, 1  ;;  %v654_v1 = vshrl.u32 %v2316_v34, 16  ;;  %v656_v2 = vshll.u32 %v2316_v34, 16  ;;  %v1924_v44 = vld [vmem:[%s2617_s7 + $0x38] sm:$0xff]  }
 0x146   :  { %v740_v5 = vor.u32 %v739_v37, %v738_v13  ;;  %v677_v60 = vsel %vm674_vm3, %v675_v49, %v676_v41  ;;  %v724_v15 = vor.u32 %v722_v57, %v720_v62  ;;  %v688_v17 = vor.u32 %v687_v7, %v686_v0  ;;  %v1925_v49 = vld [vmem:[%s2617_s7 + $0x70] sm:$0xff]   ;;  %v1935_v7 = vld [vmem:[%s2617_s7 + $0x20] sm:$0xff]  }
 0x147   :  { %v721_v4 = vsel %vm652_vm4, %v716_v38, %v720_v62  ;;  %v743_v6 = vor.u32 %v742_v58, %v741_v63  ;;  %v683_v10 = vrot.slane %v654_v1, 1  ;;  %v684_v12 = vrot.slane %v656_v2, 2  ;;  %v1926_v58 = vld [vmem:[%s2617_s7 + $0xf8] sm:$0xff]   ;;  %v1930_v38 = vld [vmem:[%s2617_s7 + $0xf0] sm:$0xff]   ;;  %v1929_v63 = vld [vmem:[%s2617_s7 + $0x68] sm:$0xff]  }
 0x148   :  { %725 = vrot.lane.b32.xlu0 %v721_v4, %s2002_s30  ;;  %v658_v19 = vrot.slane %v656_v2, 1  ;;  %1824 = vmatprep.subr.bf16.mxu0 %v1926_v58  ;;  %v1927_v62 = vld [vmem:[%s2617_s7 + $0x30] sm:$0xff]   ;;  %v1931_v2 = vld [vmem:[%s2617_s7 + $0x28] sm:$0xff]   ;;  %v1933_v4 = vld [vmem:[%s2617_s7 + $0x60] sm:$0xff]  }
 0x149   :  { %678 = vrot.lane.b32.xlu1 %v677_v60, %s2001_s27  ;;  %v744_v16 = vsel %vm682_vm5, %v740_v5, %v743_v6  ;;  %v685_v18 = vor.u32 %v684_v12, %v683_v10  ;;  %v1932_v0 = vld [vmem:[%s2617_s7 + $0xb0] sm:$0xff]   ;;  %v1936_v5 = vld [vmem:[%s2617_s7 + $0xa8] sm:$0xff]   ;;  %v1937_v60 = vld [vmem:[%s2617_s7 + $0x58] sm:$0xff]  }
 0x14a   :  { %v659_v22 = vor.u32 %v658_v19, %v654_v1  ;;  %v1934_v1 = vld [vmem:[%s2617_s7 + $0xe8] sm:$0xff]   ;;  %v1940_v10 = vld [vmem:[%s2617_s7 + $0xa0] sm:$0xff]   ;;  %v1942_v12 = vld [vmem:[%s2617_s7 + $0xd8] sm:$0xff]  }
 0x14b   :  { %v689_v21 = vsel %vm682_vm5, %v685_v18, %v688_v17  ;;  %v1943_v18 = vld [vmem:[%s2617_s7 + $0x10] sm:$0xff]   ;;  %v1945_v19 = vld [vmem:[%s2617_s7 + $0x48] sm:$0xff]  }
 0x14c   :  { %745 = vrot.lane.b32.xlu0 %v744_v16, %s2003_s0  ;;  %v664_v23 = vsel %vm652_vm4, %v659_v22, %v663_v25  ;;  %v1944_v16 = vld [vmem:[%s2617_s7 + $0x98] sm:$0xff]   ;;  %v1950_v22 = vld [vmem:[%s2617_s7 + $0xc8] sm:$0xff]  }
 0x14d   :  { %727 = vrot.lane.b32.xlu1 %v724_v15, %s2002_s30  ;;  %v1941_v15 = vld [vmem:[%s2617_s7 + $0x50] sm:$0xff]  }
 0x150   :  { %690 = vrot.lane.b32.xlu0 %v689_v21, %s2003_s0  ;;  %v1948_v21 = vld [vmem:[%s2617_s7 + $0x90] sm:$0xff]  }
 0x151   :  { %692 = vrot.lane.b32.xlu1 %v688_v17, %s2003_s0  ;;  %v1946_v17 = vld [vmem:[%s2617_s7 + $0xd0] sm:$0xff]  }
 0x154   :  { %736 = vrot.lane.b32.xlu0 %v732_v11, %s2001_s27 }
 0x155   :  { %668 = vrot.lane.b32.xlu1 %v664_v23, %s2002_s30  ;;  %v1947_v23 = vld [vmem:[%s2617_s7 + $0x8] sm:$0xff]  }
 0x159   :  { %747 = vrot.lane.b32.xlu1 %v743_v6, %s2003_s0  ;;  %v1938_v6 = vld [vmem:[%s2617_s7 + $0xe0] sm:$0xff]  }
 0x1b2   :  { %v681_v24 = vpop.permute.xlu0 %680 }
 0x1b6   :  { %v671_v26 = vpop.permute.xlu0 %670 }
 0x1b7   :  { %v735_v27 = vpop.permute.xlu1 %734  ;;  %v697_v20 = vsel %vm429_vm0, %v2296_v29, %v671_v26  ;;  %v1952_v26 = vld [vmem:[%s2617_s7 + $0x88] sm:$0xff]  }
 0x1b8   :  { %v702_v59 = vsel %vm698_vm7, %v697_v20, %v681_v24  ;;  %v1949_v24 = vld [vmem:[%s2617_s7 + $0x40] sm:$0xff]  }
 0x1ba   :  { %v726_v28 = vpop.permute.xlu0 %725 }
 0x1bb   :  { %v679_v31 = vpop.permute.xlu1 %678  ;;  %v750_v33 = vsel %vm429_vm0, %v2302_v43, %v726_v28 }
 0x1bc   :  { %v754_v35 = vsel %vm698_vm7, %v750_v33, %v735_v27  ;;  %v1951_v27 = vld [vmem:[%s2617_s7] sm:$0xff]  }
 0x1be   :  { %v746_v36 = vpop.permute.xlu0 %745 }
 0x1bf   :  { %v728_v39 = vpop.permute.xlu1 %727  ;;  %v758_v40 = vsel %vm703_vm6, %v754_v35, %v746_v36 }
 0x1c0   :  { %v762_v8 = vshrl.u32 %v758_v40, 16  ;;  %v765_v41 = vshll.u32 %v758_v40, 16  ;;  %v752_v42 = vsel %vm429_vm0, %v2307_v30, %v728_v39 }
 0x1c2   :  { %v764_v9 = vrot.slane %v762_v8, 2  ;;  %v767_v45 = vrot.slane %v765_v41, 3  ;;  %v691_v46 = vpop.permute.xlu0 %690 }
 0x1c3   :  { %v693_v47 = vpop.permute.xlu1 %692 }
 0x1c4   :  { %v768_v43 = vor.u32 %v767_v45, %v764_v9  ;;  %v708_v25 = vsel %vm703_vm6, %v702_v59, %v693_v47 }
 0x1c6   :  { %v737_v32 = vpop.permute.xlu0 %736  ;;  %v782_v29 = vsel %vm781_vm10, %v708_v25, %v768_v43 }
 0x1c7   :  { %v669_v48 = vpop.permute.xlu1 %668  ;;  %v756_v50 = vsel %vm698_vm7, %v752_v42, %v737_v32 }
 0x1c8   :  { %v695_v53 = vsel %vm429_vm0, %v2316_v34, %v669_v48  ;;  %v1923_v34 = vld [vmem:[%s2617_s7 + $0x78] sm:$0xff]   ;;  %vm2005_vm0 = vmmov 0  }
 0x1c9   :  { %v700_v51 = vsel %vm698_vm7, %v695_v53, %v679_v31  ;;  %1802 = vmatprep.subr.bf16.mxu1 %v1923_v34 }
 0x1ca   :  { %v705_v52 = vsel %vm703_vm6, %v700_v51, %v691_v46  ;;  %1803 = vmatpush3.bf16.msra.mxu1 %v1924_v44 }
 0x1cb   :  { %1889 = vmatprep.mubr.bf16.mxu0 %v705_v52  ;;  %v748_v11 = vpop.permute.xlu1 %747  ;;  %1804 = vmatprep.subr.bf16.mxu1 %v1925_v49 }
 0x1cc   :  { %v760_v55 = vsel %vm703_vm6, %v756_v50, %v748_v11  ;;  %1890 = vmatmul.mubr.bf16.vlgmr.msra.gmra.mxu0 %v782_v29 }
 0x1cd   :  { %v769_v56 = vshrl.u32 %v760_v55, 16  ;;  %v772_v54 = vshll.u32 %v760_v55, 16  ;;  %1825 = vmatpush3.bf16.msra.mxu0 %v1928_v61 }
 0x1ce   :  { %1826 = vmatprep.subr.bf16.mxu0 %v1930_v38  ;;  %1805 = vmatpush3.bf16.msra.mxu1 %v1927_v62 }
 0x1cf   :  { %v771_v30 = vrot.slane %v769_v56, 2  ;;  %v774_v57 = vrot.slane %v772_v54, 3  ;;  %1806 = vmatprep.subr.bf16.mxu1 %v1929_v63 }
 0x1d1   :  { %v775_v13 = vor.u32 %v774_v57, %v771_v30  ;;  %1827 = vmatpush3.bf16.msra.mxu0 %v1932_v0 }
 0x1d2   :  { %1828 = vmatprep.subr.bf16.mxu0 %v1934_v1  ;;  %1807 = vmatpush3.bf16.msra.mxu1 %v1931_v2 }
 0x1d3   :  { %v776_v37 = vsel %vm761_vm8, %v768_v43, %v775_v13  ;;  %1808 = vmatprep.subr.bf16.mxu1 %v1933_v4 }
 0x1d4   :  { %1893 = vmatprep.mubr.bf16.mxu0 %v776_v37 }
 0x1d5   :  { %1894 = vmatmul.mubr.bf16.gmra.mxu0 %v775_v13 }
 0x1d6   :  { %1829 = vmatpush3.bf16.msra.mxu0 %v1936_v5  ;;  %1809 = vmatpush3.bf16.msra.mxu1 %v1935_v7 }
 0x1d7   :  { %1830 = vmatprep.subr.bf16.mxu0 %v1938_v6  ;;  %1810 = vmatprep.subr.bf16.mxu1 %v1937_v60 }
 0x1da   :  { %1831 = vmatpush3.bf16.msra.mxu0 %v1940_v10  ;;  %1811 = vmatpush3.bf16.msra.mxu1 %v1939_v14 }
 0x1db   :  { %1832 = vmatprep.subr.bf16.mxu0 %v1942_v12  ;;  %1812 = vmatprep.subr.bf16.mxu1 %v1941_v15 }
 0x1de   :  { %1833 = vmatpush3.bf16.msra.mxu0 %v1944_v16  ;;  %1813 = vmatpush3.bf16.msra.mxu1 %v1943_v18 }
 0x1df   :  { %1834 = vmatprep.subr.bf16.mxu0 %v1946_v17  ;;  %1814 = vmatprep.subr.bf16.mxu1 %v1945_v19 }
 0x1e2   :  { %1835 = vmatpush3.bf16.msra.mxu0 %v1948_v21  ;;  %1815 = vmatpush3.bf16.msra.mxu1 %v1947_v23  ;;  %v965_v23 = vld [vmem:[%s2615_s5] sm:$0x1] }
 0x1e3   :  { %1836 = vmatprep.subr.bf16.mxu0 %v1950_v22  ;;  %1816 = vmatprep.subr.bf16.mxu1 %v1949_v24 }
 0x1e6   :  { %1837 = vmatpush3.bf16.msra.mxu0 %v1952_v26  ;;  %1817 = vmatpush3.bf16.msra.mxu1 %v1951_v27  ;;  %v967_v27 = vld [vmem:[%s2616_s6] sm:$0x1] }
 0x28c   :  { %v2448_v28 = vpop.f32.mrf.mxu0 }
 0x28d   :  { %v935_v39 = vmul.f32 %v2448_v28, %v2448_v28  ;;  %v914_v45 = vsel %vm698_vm7, %v2448_v28, 0.0 }
 0x28e   :  { %v2450_v31 = vpop.f32.mrf.mxu0 }
 0x28f   :  { %v933_v35 = vmul.f32 %v2450_v31, %v2450_v31  ;;  %v911_v40 = vsel %vm698_vm7, %v2450_v31, 0.0  ;;  %v943_v48 = vsel %vm698_vm7, %v935_v39, 0.0 }
 0x290   :  { %v2452_v33 = vpop.f32.mrf.mxu0 }
 0x291   :  { %v940_v46 = vsel %vm698_vm7, %v933_v35, 0.0  ;;  %v936_v47 = vmul.f32 %v2452_v33, %v2452_v33  ;;  %v916_v42 = vsel %vm698_vm7, %v2452_v33, 0.0 }
 0x292   :  { %v2456_v36 = vpop.f32.mrf.mxu0 }
 0x293   :  { %v912_v8 = vsel %vm698_vm7, %v2456_v36, 0.0  ;;  %v934_v41 = vmul.f32 %v2456_v36, %v2456_v36  ;;  %v945_v29 = vsel %vm698_vm7, %v936_v47, 0.0 }
 0x294   :  { %v913_v9 = vadd.f32 %v912_v8, %v911_v40 }
 0x295   :  { %v941_v20 = vsel %vm698_vm7, %v934_v41, 0.0  ;;  %v1895_v43 = vpop.f32.mrf.mxu0 }
 0x296   :  { %v915_v32 = vadd.f32 %v914_v45, %v913_v9  ;;  %v942_v59 = vadd.f32 %v941_v20, %v940_v46  ;;  %v939_v57 = vmul.f32 %v1895_v43, %v1895_v43  ;;  %v923_v49 = vsel %vm922_vm11, %v1895_v43, 0.0 }
 0x297   :  { %v897_v25 = vpop.f32.mrf.mxu0 }
 0x298   :  { %v944_v53 = vadd.f32 %v943_v48, %v942_v59  ;;  %v917_v50 = vadd.f32 %v916_v42, %v915_v32  ;;  %v918_v51 = vsel %vm698_vm7, %v897_v25, 0.0  ;;  %v937_v52 = vmul.f32 %v897_v25, %v897_v25 }
 0x299   :  { %v1896_v11 = vpop.f32.mrf.mxu0  ;;  %v951_v62 = vsel %vm922_vm11, %v939_v57, 0.0 }
 0x29a   :  { %v919_v55 = vadd.f32 %v918_v51, %v917_v50  ;;  %v946_v56 = vadd.f32 %v945_v29, %v944_v53  ;;  %v947_v54 = vsel %vm698_vm7, %v937_v52, 0.0 }
 0x29b   :  { %v900_v30 = vpop.f32.mrf.mxu0 }
 0x29c   :  { %v948_v13 = vadd.f32 %v947_v54, %v946_v56  ;;  %v920_v37 = vsel %vm698_vm7, %v900_v30, 0.0  ;;  %v938_v34 = vmul.f32 %v900_v30, %v900_v30 }
 0x29d   :  { %v921_v44 = vadd.f32 %v920_v37, %v919_v55 }
 0x29e   :  { %v949_v58 = vsel %vm698_vm7, %v938_v34, 0.0 }
 0x29f   :  { %v924_v61 = vadd.f32 %v923_v49, %v921_v44  ;;  %v950_v38 = vadd.f32 %v949_v58, %v948_v13  ;;  %v1953_v44 = vld [vmem:[%s2617_s7 + $0xc0] sm:$0xff]  }
 0x2a0   :  { %1838 = vmatprep.subr.bf16.mxu0 %v1953_v44 }
 0x2a1   :  { %v925_v63 = vrot.slane %v924_v61, 4  ;;  %v952_v0 = vadd.f32 %v951_v62, %v950_v38  ;;  %v1955_v38 = vld [vmem:[%s2617_s7 + $0x80] sm:$0xff]  }
 0x2a2   :  { %1839 = vmatpush3.bf16.msra.mxu0 %v1955_v38 }
 0x2a3   :  { %v926_v1 = vadd.f32 %v925_v63, %v924_v61  ;;  %v953_v2 = vrot.slane %v952_v0, 4  ;;  %v1954_v61 = vld [vmem:[%s2617_s7 + $0x178] sm:$0xff]  }
 0x2a4   :  { %1846 = vmatprep.subr.bf16.mxu1 %v1954_v61 }
 0x2a5   :  { %v927_v4 = vrot.slane %v926_v1, 2  ;;  %v954_v5 = vadd.f32 %v953_v2, %v952_v0 }
 0x2a7   :  { %v928_v6 = vadd.f32 %v927_v4, %v926_v1  ;;  %v955_v7 = vrot.slane %v954_v5, 2 }
 0x2a9   :  { %v929_v60 = vrot.slane %v928_v6, 1  ;;  %v956_v10 = vadd.f32 %v955_v7, %v954_v5  ;;  %v2004_v5 = vmov 0.0  }
 0x2aa   :  { %1897 = vmatprep.subr.bf16.mxu0 %v2004_v5 }
 0x2ab   :  { %v930_v12 = vadd.f32 %v929_v60, %v928_v6  ;;  %v957_v14 = vrot.slane %v956_v10, 1 }
 0x2ad   :  { %v932_v15 = vmul.f32 0.018518519, %v930_v12  ;;  %v958_v16 = vadd.f32 %v957_v14, %v956_v10 }
 0x2af   :  { %v959_v17 = vmul.f32 0.018518519, %v958_v16  ;;  %v960_v18 = vmul.f32 %v932_v15, %v932_v15 }
 0x2b1   :  { %v961_v19 = vsub.f32 %v959_v17, %v960_v18 }
 0x2b3   :  { %v962_v21 = vmax.f32 %v961_v19, 0.0 }
 0x2b5   :  { %v963_v22 = vadd.f32 1e-05, %v962_v21 }
 0x2b7   :  { %1977 = vrsqrt.f32 %v963_v22 }
 0x2c4   :  { %v1978_v24 = vpop.eup %1977 }
 0x2c5   :  { %v966_v26 = vmul.f32 %v1978_v24, %v965_v23 }
 0x2c7   :  { %v968_v35 = vmul.f32 %v966_v26, %v932_v15  ;;  %v973_v39 = vrot.slane %v966_v26, %v2068_v3 }
 0x2c9   :  { %v969_v40 = vsub.f32 %v967_v27, %v968_v35  ;;  %v974_v8 = vmul.f32 %v973_v39, %v2450_v31  ;;  %v975_v41 = vmul.f32 %v973_v39, %v2456_v36  ;;  %v976_v9 = vmul.f32 %v2448_v28, %v973_v39 }
 0x2ca   :  { %v977_v45 = vmul.f32 %v2452_v33, %v973_v39  ;;  %v997_v47 = vmul.f32 %v973_v39, %v897_v25  ;;  %v998_v20 = vmul.f32 %v973_v39, %v900_v30  ;;  %v999_v32 = vmul.f32 %v1895_v43, %v973_v39 }
 0x2cb   :  { %v982_v46 = vrot.slane %v969_v40, %v2068_v3 }
 0x2cd   :  { %v984_v59 = vadd.f32 %v982_v46, %v974_v8  ;;  %v985_v48 = vadd.f32 %v982_v46, %v975_v41  ;;  %v986_v42 = vadd.f32 %v982_v46, %v976_v9  ;;  %v987_v53 = vadd.f32 %v982_v46, %v977_v45 }
 0x2ce   :  { %v1000_v50 = vadd.f32 %v997_v47, %v982_v46  ;;  %v1001_v51 = vadd.f32 %v998_v20, %v982_v46  ;;  %v1002_v31 = vadd.f32 %v999_v32, %v982_v46 }
 0x2cf   :  { %v988_v29 = vmax.f32 %v984_v59, 0.0  ;;  %v989_v36 = vmax.f32 %v985_v48, 0.0  ;;  %v990_v52 = vmax.f32 %v986_v42, 0.0  ;;  %v991_v28 = vmax.f32 %v987_v53, 0.0 }
 0x2d0   :  { %v1003_v11 = vmax.f32 %v1000_v50, 0.0  ;;  %v1004_v33 = vmax.f32 %v1001_v51, 0.0  ;;  %v1005_v55 = vmax.f32 %v1002_v31, 0.0 }
 0x2d1   :  { %992 = vst.msk [vmem:[#allocation3] sm:$0xff] %vm698_vm7, %v988_v29  ;;  %993 = vst.msk [vmem:[#allocation3 + $0x8] sm:$0xff] %vm698_vm7, %v989_v36 }
 0x2d2   :  { %994 = vst.msk [vmem:[#allocation3 + $0x10] sm:$0xff] %vm698_vm7, %v990_v52  ;;  %1009 = vst.msk [vmem:[#allocation3 + $0x25] sm:$0xff] %vm698_vm7, %v1003_v11 }
 0x2d3   :  { %996 = vst.msk [vmem:[#allocation3 + $0x18] sm:$0x3] %vm995_vm12, %v991_v28 }
 0x2d4   :  { %1008 = vst.msk [vmem:[#allocation3 + $0x1d] sm:$0xf8] %vm1007_vm13, %v991_v28 }
 0x2d5   :  { %1010 = vst.msk [vmem:[#allocation3 + $0x2d] sm:$0xff] %vm698_vm7, %v1004_v33 }
 0x2d6   :  { %1012 = vst.msk [vmem:[#allocation3 + $0x35] sm:$0x1f] %vm1011_vm14, %v1005_v55 }
 0x2d8   :  { %v1013_v3 = vld [vmem:[#allocation3] ss:$2 sm:$0xff]  ;;  %v1021_v37 = vld [vmem:[#allocation3 + $0x1] ss:$2 sm:$0xff] }
 0x2d9   :  { %v1028_v49 = vmax.f32 %v1013_v3, %v1021_v37 }
 0x2da   :  { %v1015_v43 = vld [vmem:[#allocation3 + $0x10] ss:$2 sm:$0x1f]  ;;  %v1023_v34 = vld [vmem:[#allocation3 + $0x11] ss:$2 sm:$0x1f] }
 0x2db   :  { %v1029_v58 = vmax.f32 %v1015_v43, %v1023_v34 }
 0x2dc   :  { %v1017_v25 = vld [vmem:[#allocation3 + $0x20] ss:$2 sm:$0xff]  ;;  %v1025_v54 = vld [vmem:[#allocation3 + $0x21] ss:$2 sm:$0xff] }
 0x2dd   :  { %v1019_v56 = vld [vmem:[#allocation3 + $0x30] ss:$2 sm:$0x1f]  ;;  %v1027_v30 = vld [vmem:[#allocation3 + $0x31] ss:$2 sm:$0x1f]  ;;  %v1030_v57 = vmax.f32 %v1017_v25, %v1025_v54  ;;  %v1032_v63 = vpack.c.bf16 %v1029_v58, %v1028_v49 }
 0x2de   :  { %v1031_v13 = vmax.f32 %v1019_v56, %v1027_v30  ;;  %v1956_v56 = vld [vmem:[%s2617_s7 + $0x138] sm:$0xff]   ;;  %v1958_v49 = vld [vmem:[%s2617_s7 + $0x130] sm:$0xff]  }
 0x2df   :  { %v1036_v2 = vunpack.c.l.b16 %v1032_v63  ;;  %v1077_v4 = vunpack.c.h.b16 %v1032_v63  ;;  %v1959_v58 = vld [vmem:[%s2617_s7 + $0x198] sm:$0xff]  }
 0x2e0   :  { %v1033_v62 = vpack.c.bf16 %v1031_v13, %v1030_v57  ;;  %v1957_v57 = vld [vmem:[%s2617_s7 + $0x170] sm:$0xff]  }
 0x2e1   :  { %v1051_v10 = vrot.slane %v1036_v2, 3  ;;  %v1042_v12 = vrot.slane %v1036_v2, 1  ;;  %v1071_v14 = vrot.slane %v1036_v2, 7  ;;  %v1061_v15 = vrot.slane %v1036_v2, 5 }
 0x2e2   :  { %v1037_v0 = vunpack.c.l.b16 %v1033_v62  ;;  %v1078_v1 = vunpack.c.h.b16 %v1033_v62  ;;  %v1091_v16 = vrot.slane %v1077_v4, 3  ;;  %v1047_v18 = vrot.slane %v1036_v2, 2  ;;  %v1960_v62 = vld [vmem:[%s2617_s7 + $0x168] sm:$0xff]  }
 0x2e3   :  { %v1082_v35 = vrot.slane %v1077_v4, 1  ;;  %v1057_v45 = vrot.slane %v1036_v2, 4  ;;  %v1067_v20 = vrot.slane %v1036_v2, 6  ;;  %v1087_v42 = vrot.slane %v1077_v4, 2 }
 0x2e4   :  { %v1052_v6 = vrot.slane %v1037_v0, 2  ;;  %v1072_v7 = vrot.slane %v1037_v0, 6  ;;  %v1062_v60 = vrot.slane %v1037_v0, 4  ;;  %v1092_v17 = vrot.slane %v1078_v1, 2 }
 0x2e5   :  { %v1048_v19 = vrot.slane %v1037_v0, 1  ;;  %v1043_v22 = vsel %vm1039_vm15, %v1037_v0, %v1042_v12  ;;  %v1038_v40 = vrot.slane %v1037_v0, 7  ;;  %v1058_v47 = vrot.slane %v1037_v0, 3  ;;  %v1967_v12 = vld [vmem:[%s2617_s7 + $0x118] sm:$0xff]  }
 0x2e6   :  { %v1053_v21 = vsel %vm1039_vm15, %v1052_v6, %v1051_v10  ;;  %v1073_v23 = vsel %vm1039_vm15, %v1072_v7, %v1071_v14  ;;  %v1063_v24 = vsel %vm1039_vm15, %v1062_v60, %v1061_v15  ;;  %v1044_v27 = vpack.c.b16 %v1043_v22, %v1043_v22  ;;  %v1963_v6 = vld [vmem:[%s2617_s7 + $0x160] sm:$0xff]   ;;  %v1965_v60 = vld [vmem:[%s2617_s7 + $0x188] sm:$0xff]   ;;  %v1966_v10 = vld [vmem:[%s2617_s7 + $0x158] sm:$0xff]  }
 0x2e7   :  { %v1054_v26 = vpack.c.b16 %v1053_v21, %v1053_v21  ;;  %v1049_v39 = vsel %vm1039_vm15, %v1048_v19, %v1047_v18  ;;  %v1074_v8 = vpack.c.b16 %v1073_v23, %v1073_v23  ;;  %v1064_v41 = vpack.c.b16 %v1063_v24, %v1063_v24  ;;  %v1964_v7 = vld [vmem:[%s2617_s7 + $0x120] sm:$0xff]   ;;  %v1969_v15 = vld [vmem:[%s2617_s7 + $0x150] sm:$0xff]   ;;  %v1971_v18 = vld [vmem:[%s2617_s7 + $0x148] sm:$0xff]  }
 0x2e8   :  { %1045 = vrot.lane.b32.xlu1 %v1044_v27, %s2001_s27  ;;  %v1093_v9 = vsel %vm1039_vm15, %v1092_v17, %v1091_v16  ;;  %v1040_v46 = vsel %vm1039_vm15, %v1038_v40, %v1036_v2  ;;  %v1068_v32 = vrot.slane %v1037_v0, 5  ;;  %v1083_v59 = vsel %vm1039_vm15, %v1078_v1, %v1082_v35  ;;  %v1962_v2 = vld [vmem:[%s2617_s7 + $0x190] sm:$0xff]   ;;  %v1968_v14 = vld [vmem:[%s2617_s7 + $0x180] sm:$0xff]  }
 0x2e9   :  { %1055 = vrot.lane.b32.xlu0 %v1054_v26, %s2001_s27  ;;  %v1079_v48 = vrot.slane %v1078_v1, 7  ;;  %v1088_v53 = vrot.slane %v1078_v1, 1  ;;  %v1059_v50 = vsel %vm1039_vm15, %v1058_v47, %v1057_v45  ;;  %v1097_v31 = vrot.slane %v1077_v4, 4  ;;  %v1970_v16 = vld [vmem:[%s2617_s7 + $0x110] sm:$0xff]   ;;  %v1973_v19 = vld [vmem:[%s2617_s7 + $0x140] sm:$0xff]  }
 0x2ea   :  { %v1069_v51 = vsel %vm1039_vm15, %v1068_v32, %v1067_v20  ;;  %v1098_v29 = vrot.slane %v1078_v1, 3  ;;  %v1094_v11 = vpack.c.b16 %v1093_v9, %v1093_v9  ;;  %v1084_v33 = vpack.c.b16 %v1083_v59, %v1083_v59  ;;  %v1961_v1 = vld [vmem:[%s2617_s7 + $0x128] sm:$0xff]   ;;  %v1974_v21 = vld [vmem:[%s2617_s7 + $0x100] sm:$0xff]  }
 0x2eb   :  { %v2524_v36 = vsel %vm1039_vm15, %v1079_v48, %v1077_v4  ;;  %v1089_v52 = vsel %vm1039_vm15, %v1088_v53, %v1087_v42  ;;  %v1050_v55 = vpack.c.b16 %v1049_v39, %v1049_v39  ;;  %v1041_v3 = vpack.c.b16 %v1040_v46, %v1040_v46  ;;  %v1736_v59 = vld [vmem:[%s2618_s8] ss:$0 sm:$0xff]  ;;  %s1979_s8 = scalar_lea.vmem %s1721_s23, 32 }
 0x2ec   :  { %1065 = vrot.lane.b32.xlu1 %v1064_v41, %s2001_s27  ;;  %v1099_v28 = vsel %vm1039_vm15, %v1098_v29, %v1097_v31  ;;  %v1060_v13 = vpack.c.b16 %v1059_v50, %v1059_v50  ;;  %v1070_v37 = vpack.c.b16 %v1069_v51, %v1069_v51  ;;  %v1090_v63 = vpack.c.b16 %v1089_v52, %v1089_v52  ;;  %p1980_p0 = scmp.ne.s32.totalorder %s1721_s23, %s1979_s8  ;;  %p1985_p2 = scmp.lt.s32.totalorder %s1979_s8, %s1979_s8 }
 0x2ed   :  { %1075 = vrot.lane.b32.xlu0 %v1074_v8, %s2001_s27  ;;  %v1100_v17 = vpack.c.b16 %v1099_v28, %v1099_v28  ;;  %v1081_v23 = vpack.c.b16 %v2524_v36, %v2524_v36  ;;  %v1711_v28 = vld [vmem:[%s2619_s9] sm:$0x3] }
 0x2ee   :  { %p1986_p3 = por %p1985_p2, %p1984_p1 }
 0x2f0   :  { %1085 = vrot.lane.b32.xlu1 %v1084_v33, %s2001_s27  ;;  %p1987_p4 = pnand %p1986_p3, %p1980_p0 }
 0x2f1   :  { %1095 = vrot.lane.b32.xlu0 %v1094_v11, %s2001_s27 }
 0x35a   :  { %v1046_v25 = vpop.permute.xlu1 %1045 }
 0x35b   :  { %v1056_v43 = vpop.permute.xlu0 %1055  ;;  %v1103_v30 = vsel %vm698_vm7, %v1041_v3, %v1046_v25 }
 0x35c   :  { %v1107_v54 = vsel %vm698_vm7, %v1050_v55, %v1056_v43 }
 0x35d   :  { %1583 = vmatprep.mubr.bf16.mxu1 %v1107_v54 }
 0x35e   :  { %1584 = vmatmul.mubr.bf16.vlgmr.msra.gmra.mxu1 %v1103_v30  ;;  %v1066_v44 = vpop.permute.xlu1 %1065 }
 0x35f   :  { %1847 = vmatpush3.bf16.msra.mxu1 %v1956_v56  ;;  %v1076_v34 = vpop.permute.xlu0 %1075  ;;  %v1111_v61 = vsel %vm698_vm7, %v1060_v13, %v1066_v44 }
 0x360   :  { %v1115_v38 = vsel %vm698_vm7, %v1070_v37, %v1076_v34  ;;  %1848 = vmatprep.subr.bf16.mxu1 %v1957_v57 }
 0x361   :  { %1623 = vmatprep.mubr.bf16.mxu0 %v1115_v38 }
 0x362   :  { %1624 = vmatmul.mubr.bf16.vlgmr.msra.gmra.mxu0 %v1111_v61  ;;  %v1086_v22 = vpop.permute.xlu1 %1085 }
 0x363   :  { %1849 = vmatpush3.bf16.msra.mxu1 %v1958_v49  ;;  %1898 = vmatpush3.bf16.msra.mxu0 %v1959_v58  ;;  %v1096_v0 = vpop.permute.xlu0 %1095  ;;  %v1119_v24 = vsel %vm698_vm7, %v1081_v23, %v1086_v22 }
 0x364   :  { %1850 = vmatprep.subr.bf16.mxu1 %v1960_v62  ;;  %v1123_v4 = vsel %vm698_vm7, %v1090_v63, %v1096_v0  ;;  %1899 = vmatprep.subr.bf16.mxu0 %v2004_v5 }
 0x365   :  { %1663 = vmatprep.mubr.bf16.mxu1 %v1123_v4  ;;  %1905 = vmatprep.mubr.msk.bf16.mxu0 %vm2005_vm0, %v2004_v5 }
 0x367   :  { %1851 = vmatpush3.bf16.msra.mxu1 %v1961_v1  ;;  %1900 = vmatpush3.bf16.msra.mxu0 %v1962_v2 }
 0x368   :  { %1852 = vmatprep.subr.bf16.mxu1 %v1963_v6  ;;  %1901 = vmatprep.subr.bf16.mxu0 %v2004_v5 }
 0x36b   :  { %1853 = vmatpush3.bf16.msra.mxu1 %v1964_v7  ;;  %1902 = vmatpush3.bf16.msra.mxu0 %v1965_v60 }
 0x36c   :  { %1854 = vmatprep.subr.bf16.mxu1 %v1966_v10  ;;  %1903 = vmatprep.subr.bf16.mxu0 %v2004_v5  ;;  %v1972_v5 = vld [vmem:[%s2617_s7 + $0x108] sm:$0xff]  }
 0x36f   :  { %1855 = vmatpush3.bf16.msra.mxu1 %v1967_v12  ;;  %1904 = vmatpush3.bf16.msra.mxu0 %v1968_v14 }
 0x370   :  { %1856 = vmatprep.subr.bf16.mxu1 %v1969_v15 }
 0x372   :  { %1906 = vmatmul.mubr.msk.bf16.vlgmr.msra.gmra.mxu0 %vm698_vm7, %v1100_v17 }
 0x373   :  { %1857 = vmatpush3.bf16.msra.mxu1 %v1970_v16 }
 0x374   :  { %1858 = vmatprep.subr.bf16.mxu1 %v1971_v18 }
 0x377   :  { %1859 = vmatpush3.bf16.msra.mxu1 %v1972_v5 }
 0x378   :  { %1860 = vmatprep.subr.bf16.mxu1 %v1973_v19 }
 0x37b   :  { %1861 = vmatpush3.bf16.msra.mxu1 %v1974_v21 }
 0x37e   :  { %1664 = vmatmul.mubr.bf16.vlgmr.msra.gmra.mxu1 %v1119_v24 }
 0x41e   :  { %v1818_v26 = vpop.f32.mrf.mxu1 }
 0x420   :  { %v1819_v27 = vpop.f32.mrf.mxu1 }
 0x421   :  { %v1820_v32 = vadd.f32 %v1819_v27, %v1818_v26 }
 0x422   :  { %v1821_v35 = vpop.f32.mrf.mxu1  ;;  %v1840_v39 = vpop.f32.mrf.mxu0 }
 0x423   :  { %v1586_v53 = vadd.f32 %v1820_v32, %v1736_v59 }
 0x424   :  { %v1822_v40 = vpop.f32.mrf.mxu1  ;;  %v1841_v8 = vpop.f32.mrf.mxu0 }
 0x425   :  { %v1842_v48 = vadd.f32 %v1841_v8, %v1840_v39 }
 0x426   :  { %v1843_v41 = vpop.f32.mrf.mxu0 }
 0x427   :  { %v1626_v51 = vadd.f32 %v1842_v48, %v1586_v53 }
 0x428   :  { %v1844_v9 = vpop.f32.mrf.mxu0 }
 0x432   :  { %v1705_v45 = vpop.f32.mrf.mxu0 }
 0x434   :  { %v1907_v46 = vpop.f32.mrf.mxu0 }
 0x436   :  { %v1708_v47 = vpop.f32.mrf.mxu0 }
 0x438   :  { %v1908_v20 = vpop.f32.mrf.mxu0 }
 0x43e   :  { %v1862_v42 = vpop.f32.mrf.mxu1 }
 0x440   :  { %v1863_v50 = vpop.f32.mrf.mxu1 }
 0x441   :  { %v1864_v31 = vadd.f32 %v1863_v50, %v1862_v42 }
 0x442   :  { %v1865_v29 = vpop.f32.mrf.mxu1 }
 0x443   :  { %v1666_v36 = vadd.f32 %v1864_v31, %v1626_v51 }
 0x444   :  { %v1866_v52 = vpop.f32.mrf.mxu1 }
 0x445   :  { %v1706_v11 = vadd.f32 %v1705_v45, %v1666_v36 }
 0x447   :  { %v1712_v33 = vmul.f32 %v1711_v28, %v1706_v11 }
 0x449   :  { %1713 = vst.msk [vmem:[#allocation4] sm:$0x3] %vm995_vm12, %v1712_v33 }
 0x44a   :  { %1990 = shalt.err (!%p1987_p4)
}
 0x44b   :  { %1723 = dma.vmem_to_hbm [thread:$0]  %s1721_s23, 32, %s2620_s10, [#allocation5]  }
 0x44c   :  { %1999 = dma.done.wait [#allocation5], 32  }
 0x44d   :  { %2000 = vsyncadd [#allocation5], 4294967264 }
 0x44e   :  { %1727 = vsyncpa [#allocation5], 1 }

</bundles_post_ra>
